<compile_context>
chip_gen: v7x
topology: tpu7x:2x2x1
jax: 0.10.0
libtpu: 0.0.40
codegen_flags: <defaults>
</compile_context>

<pallas_src>
import functools

import jax
import jax.numpy as jnp
from jax.experimental import pallas as pl
from jax.experimental.pallas import tpu as pltpu


# ----------------------------------------------------------------------------
# Helpers
# ----------------------------------------------------------------------------
def _round_up(x, m):
    return (x + m - 1) // m * m


def _pad2(x, rows, cols, dtype):
    r, c = x.shape
    x = x.astype(dtype)
    if r == rows and c == cols:
        return x
    return jnp.zeros((rows, cols), dtype).at[:r, :c].set(x)


# Default tile sizes: a few hundred KB of VMEM per step -> fits the default
# scoped VMEM limit on v5e (16 MiB), v6e (32 MiB) and v7x (32/64 MiB).
_TM, _TN, _TK = 256, 256, 512


def prep_rhs(b, tn=_TN, tk=_TK):
    """Pad + bf16-cast a static RHS once (at init) so no per-call padding copy."""
    K, N = b.shape
    tk_ = min(tk, _round_up(K, 128))
    tn_ = min(tn, _round_up(N, 128))
    return (_pad2(b, _round_up(K, tk_), _round_up(N, tn_), jnp.bfloat16), (K, N))


# ----------------------------------------------------------------------------
# Fused tiled matmul: act(scale * (A @ B) + bias)
# ----------------------------------------------------------------------------
def _mm_epilogue(y, bias, scale, act):
    if scale != 1.0:
        y = y * scale
    y = y + bias
    if act == "relu":
        y = jnp.maximum(y, 0.0)
    elif act == "tanh":
        y = jnp.tanh(y)
    return y


def _mm_kernel_multi_k(a_ref, b_ref, bias_ref, o_ref, *, scale, act):
    # Output block is resident across the (innermost, "arbitrary") K axis:
    # accumulate directly into it -> no duplicate accumulator scratch.
    @pl.when(pl.program_id(2) == 0)
    def _():
        o_ref[...] = jnp.zeros_like(o_ref)

    o_ref[...] += jnp.dot(a_ref[...], b_ref[...],
                          preferred_element_type=jnp.float32)

    @pl.when(pl.program_id(2) == pl.num_programs(2) - 1)
    def _():
        o_ref[...] = _mm_epilogue(o_ref[...], bias_ref[...], scale, act)


def _mm_kernel_single_k(a_ref, b_ref, bias_ref, o_ref, *, scale, act):
    y = jnp.dot(a_ref[...], b_ref[...], preferred_element_type=jnp.float32)
    o_ref[...] = _mm_epilogue(y, bias_ref[...], scale, act)


def fused_matmul(a, b, *, bias=None, scale=1.0, act="none",
                 tm=_TM, tn=_TN, tk=_TK):
    """act(scale * (A @ B) + bias) with bf16 operands and f32 accumulation.

    `b` may be a raw (K, N) array or the (padded bf16 array, (K, N)) tuple
    produced by `prep_rhs` (static weights are prepared once at init).
    Returns an f32 (M, N) array.
    """
    M, K = a.shape
    if isinstance(b, tuple):
        b_p, (Kb, N) = b
    else:
        Kb, N = b.shape
        b_p = None
    assert K == Kb

    tm_ = min(tm, _round_up(M, 8))
    tn_ = min(tn, _round_up(N, 128))
    tk_ = min(tk, _round_up(K, 128))
    Mp, Np, Kp = _round_up(M, tm_), _round_up(N, tn_), _round_up(K, tk_)

    a_p = _pad2(a, Mp, Kp, jnp.bfloat16)
    if b_p is None:
        b_p = _pad2(b, Kp, Np, jnp.bfloat16)
    assert b_p.shape == (Kp, Np)
    if bias is None:
        bias_p = jnp.zeros((1, Np), jnp.float32)
    else:
        bias_p = _pad2(bias.reshape(1, N).astype(jnp.float32), 1, Np, jnp.float32)

    nk = Kp // tk_
    if nk == 1:
        # Small-K specialization: no K grid, no init/finalize phases.
        out = pl.pallas_call(
            functools.partial(_mm_kernel_single_k, scale=scale, act=act),
            out_shape=jax.ShapeDtypeStruct((Mp, Np), jnp.float32),
            grid_spec=pltpu.PrefetchScalarGridSpec(
                num_scalar_prefetch=0,
                grid=(Mp // tm_, Np // tn_),
                in_specs=[
                    pl.BlockSpec((tm_, Kp), lambda i, j: (i, 0)),
                    pl.BlockSpec((Kp, tn_), lambda i, j: (0, j)),
                    pl.BlockSpec((1, tn_), lambda i, j: (0, j)),
                ],
                out_specs=pl.BlockSpec((tm_, tn_), lambda i, j: (i, j)),
            ),
            compiler_params=pltpu.CompilerParams(
                dimension_semantics=("parallel", "parallel")),
        )(a_p, b_p, bias_p)
    else:
        out = pl.pallas_call(
            functools.partial(_mm_kernel_multi_k, scale=scale, act=act),
            out_shape=jax.ShapeDtypeStruct((Mp, Np), jnp.float32),
            grid_spec=pltpu.PrefetchScalarGridSpec(
                num_scalar_prefetch=0,
                grid=(Mp // tm_, Np // tn_, nk),
                in_specs=[
                    pl.BlockSpec((tm_, tk_), lambda i, j, k: (i, k)),
                    pl.BlockSpec((tk_, tn_), lambda i, j, k: (k, j)),
                    pl.BlockSpec((1, tn_), lambda i, j, k: (0, j)),
                ],
                out_specs=pl.BlockSpec((tm_, tn_), lambda i, j, k: (i, j)),
            ),
            compiler_params=pltpu.CompilerParams(
                dimension_semantics=("parallel", "parallel", "arbitrary")),
        )(a_p, b_p, bias_p)
    return out[:M, :N]


# ----------------------------------------------------------------------------
# BatchNorm (global batch statistics) + activation: row-tiled normalize kernel
# ----------------------------------------------------------------------------
def _affine_act_kernel(x_ref, s_ref, t_ref, o_ref, *, act):
    y = x_ref[...] * s_ref[...] + t_ref[...]
    if act == "tanh":
        y = jnp.tanh(y)
    elif act == "relu":
        y = jnp.maximum(y, 0.0)
    o_ref[...] = y


def pallas_bn_act(x, gamma, beta, eps=1e-5, act="none", tr=512):
    """Column-wise BatchNorm (training batch stats, biased var) + activation.

    Stats stay GLOBAL (computed once over the un-padded rows with a small jnp
    reduction); the normalize+activation runs as a row-tiled, lane-dense Pallas
    kernel.  Returns the padded (Rp, Fp=round_up(F,128)) f32 array; callers
    slice [:R, :F] when they need the logical shape.
    """
    R, F = x.shape
    x = x.astype(jnp.float32)
    mean = jnp.mean(x, axis=0, keepdims=True)
    var = jnp.mean(jnp.square(x - mean), axis=0, keepdims=True)  # biased, like torch BN
    scale = gamma.reshape(1, F).astype(jnp.float32) * jax.lax.rsqrt(var + eps)
    shift = beta.reshape(1, F).astype(jnp.float32) - mean * scale

    tr_ = min(tr, _round_up(R, 8))
    Rp = _round_up(R, tr_)
    Fp = _round_up(F, 128)
    x_p = _pad2(x, Rp, Fp, jnp.float32)
    s_p = _pad2(scale, 1, Fp, jnp.float32)
    t_p = _pad2(shift, 1, Fp, jnp.float32)

    return pl.pallas_call(
        functools.partial(_affine_act_kernel, act=act),
        out_shape=jax.ShapeDtypeStruct((Rp, Fp), jnp.float32),
        grid_spec=pltpu.PrefetchScalarGridSpec(
            num_scalar_prefetch=0,
            grid=(Rp // tr_,),
            in_specs=[
                pl.BlockSpec((tr_, Fp), lambda i: (i, 0)),
                pl.BlockSpec((1, Fp), lambda i: (0, 0)),
                pl.BlockSpec((1, Fp), lambda i: (0, 0)),
            ],
            out_specs=pl.BlockSpec((tr_, Fp), lambda i: (i, 0)),
        ),
        compiler_params=pltpu.CompilerParams(
            dimension_semantics=("parallel",)),
    )(x_p, s_p, t_p)


# ----------------------------------------------------------------------------
# Fused score kernel: sigmoid(x @ all_ent^T + bias), tiled over the entity axis
# ----------------------------------------------------------------------------
def _score_kernel(x_ref, ent_ref, bias_ref, o_ref):
    logits = jax.lax.dot_general(
        x_ref[...], ent_ref[...],
        dimension_numbers=(((1,), (1,)), ((), ())),
        preferred_element_type=jnp.float32)
    o_ref[...] = jax.nn.sigmoid(logits + bias_ref[...])


def pallas_score(x_pad, ent_pad, bias, batch, num_ent, tn=1024):
    """sigmoid(x @ all_ent^T + bias); x_pad (Bp, Fp), ent_pad (>=num_ent, Fp)."""
    Bp, Fp = x_pad.shape
    assert ent_pad.shape[1] == Fp
    tn_ = min(tn, _round_up(num_ent, 128))
    NEp = _round_up(num_ent, tn_)

    x_b = x_pad.astype(jnp.bfloat16)
    ent_b = _pad2(ent_pad[:num_ent], NEp, Fp, jnp.bfloat16)
    bias_p = _pad2(bias.reshape(1, num_ent).astype(jnp.float32), 1, NEp, jnp.float32)

    out = pl.pallas_call(
        _score_kernel,
        out_shape=jax.ShapeDtypeStruct((Bp, NEp), jnp.float32),
        grid_spec=pltpu.PrefetchScalarGridSpec(
            num_scalar_prefetch=0,
            grid=(NEp // tn_,),
            in_specs=[
                pl.BlockSpec((Bp, Fp), lambda j: (0, 0)),
                pl.BlockSpec((tn_, Fp), lambda j: (j, 0)),
                pl.BlockSpec((1, tn_), lambda j: (0, j)),
            ],
            out_specs=pl.BlockSpec((Bp, tn_), lambda j: (0, j)),
        ),
        compiler_params=pltpu.CompilerParams(
            dimension_semantics=("parallel",)),
    )(x_b, ent_b, bias_p)
    return out[:batch, :num_ent]


# ----------------------------------------------------------------------------
# Parameter initialization (deterministic, xavier-normal like the module)
# ----------------------------------------------------------------------------
def xavier_normal(key, shape, gain):
    fan_in, fan_out = shape[0], shape[1]
    std = gain * (2.0 / (fan_in + fan_out)) ** 0.5
    return std * jax.random.normal(key, shape, jnp.float32)


def init_params(key, num_ent, num_rel, emb_dim):
    gain = 2.0 ** 0.5  # nn.init.calculate_gain('relu')
    ks = jax.random.split(key, 10)
    out_c = 2 * emb_dim
    fc_in = out_c * 14 * 14                 # 39200
    conv_w = (2.0 / 49.0) ** 0.5 * jax.random.normal(ks[7], (out_c, 1, 7, 7),
                                                     jnp.float32)
    # fc weight stored PRE-TRANSPOSED (in_features, out_features): no runtime .T
    fc_w_t = (1.0 / fc_in) ** 0.5 * jax.random.normal(ks[8], (fc_in, out_c),
                                                      jnp.float32)
    p = {
        "ent_emb": xavier_normal(ks[0], (num_ent, emb_dim), gain),
        "rel_emb": xavier_normal(ks[1], (num_rel, emb_dim), gain),
        # CompGCNCov weights: padded + bf16-cast once here (never per call).
        "in_w": prep_rhs(xavier_normal(ks[2], (emb_dim, out_c), gain)),
        "out_w": prep_rhs(xavier_normal(ks[3], (emb_dim, out_c), gain)),
        "loop_w": prep_rhs(xavier_normal(ks[4], (emb_dim, out_c), gain)),
        "w_rel": prep_rhs(xavier_normal(ks[5], (emb_dim, out_c), gain)),
        "loop_rel": xavier_normal(ks[6], (1, emb_dim), gain),
        "gc_bias": jnp.zeros((out_c,), jnp.float32),
        "gc_bn_gamma": jnp.ones((out_c,), jnp.float32),
        "gc_bn_beta": jnp.zeros((out_c,), jnp.float32),
        # ConvE decoder: conv kernel stored as its (49, out_c) im2col matrix.
        "conv_w": prep_rhs(conv_w.reshape(out_c, 49).T),
        "bn1_gamma": jnp.ones((out_c,), jnp.float32),
        "bn1_beta": jnp.zeros((out_c,), jnp.float32),
        "fc_w_t": prep_rhs(fc_w_t),
        "fc_b": jnp.zeros((out_c,), jnp.float32),
        "bn2_gamma": jnp.ones((out_c,), jnp.float32),
        "bn2_beta": jnp.zeros((out_c,), jnp.float32),
        "score_bias": jnp.zeros((num_ent,), jnp.float32),   # self.bias
    }
    return p


# ----------------------------------------------------------------------------
# Forward pass (CompGCNCov + ConvE decoder)
# ----------------------------------------------------------------------------
def my_compgcn_forward(params, graph, triples):
    src = graph["src"]
    dst = graph["dst"]
    edge_type = graph["edge_type"]
    edge_norm = graph["edge_norm"]

    x = params["ent_emb"]            # (num_ent, emb_dim)
    r = params["rel_emb"]            # (num_rel, emb_dim)
    num_ent, emb_dim = x.shape
    out_c = 2 * emb_dim
    E = src.shape[0]
    half = E // 2

    # ---- CompGCNCov message passing (opn='mult') ------------------------------
    # edge_norm and the 1/3 reduce factor commute with the linear maps, so fold
    # them into the (E, emb_dim) composition instead of the (E, 2*emb_dim) msgs.
    h_src = x[src]
    rel_e = r[edge_type]
    edge_data = (h_src * rel_e) * (edge_norm * (1.0 / 3.0))[:, None]

    msg_in = fused_matmul(edge_data[:half], params["in_w"])    # (E/2, 200)
    msg_out = fused_matmul(edge_data[half:], params["out_w"])  # (E/2, 200)
    msg = jnp.concatenate([msg_in, msg_out], axis=0)
    # TODO(synk): DGL update_all scatter-sum has no clean BlockSpec expression;
    # done with jax.ops.segment_sum.
    agg = jax.ops.segment_sum(msg, dst, num_segments=num_ent)

    # loop term: /3 and gc_bias fused into the matmul epilogue.
    loop_term = fused_matmul(x * params["loop_rel"], params["loop_w"],
                             bias=params["gc_bias"], scale=1.0 / 3.0)
    y_pre = agg + loop_term
    # BatchNorm1d (batch stats) + tanh; returns lane-dense padded (num_ent_p, 256)
    y_pad = pallas_bn_act(y_pre, params["gc_bn_gamma"], params["gc_bn_beta"],
                          eps=1e-5, act="tanh")
    r_out = fused_matmul(r, params["w_rel"])                   # (num_rel, 200)

    # ---- index_select ----------------------------------------------------------
    head = triples[:, 0]
    rela = triples[:, 1]
    head_emb = y_pad[head, :out_c]   # (B, 200)   (self.drop = identity)
    rela_emb = r_out[rela]           # (B, 200)

    # ---- ConvE decoder ---------------------------------------------------------
    B = head_emb.shape[0]
    stack = jnp.concatenate(
        [head_emb.reshape(B, 1, out_c), rela_emb.reshape(B, 1, out_c)], axis=1)
    stack = stack.reshape(B, 1, 20, 20)          # NCHW, as in PyTorch

    # bn0 = BatchNorm2d(1): one scalar mean/var over every element (tiny glue)
    m0 = jnp.mean(stack)
    v0 = jnp.mean(jnp.square(stack - m0))
    x0 = (stack - m0) * jax.lax.rsqrt(v0 + 1e-5)

    # TODO(synk): im2col patch extraction stays in jnp (49 strided slices of a
    # tiny 20x20 image); the heavy conv matmul + BN + ReLU run in Pallas.
    patches = []
    for kh in range(7):
        for kw in range(7):
            patches.append(x0[:, 0, kh:kh + 14, kw:kw + 14])
    patches = jnp.stack(patches, axis=-1).reshape(B * 14 * 14, 49)
    conv_out = fused_matmul(patches, params["conv_w"])         # (B*196, 200)

    # bn1 (per-channel batch stats) + ReLU (channels-last layout)
    conv_bn = pallas_bn_act(conv_out, params["bn1_gamma"], params["bn1_beta"],
                            eps=1e-5, act="relu")[:B * 196, :out_c]

    # back to NCHW flatten order so the fc matches torch's x.view(B, -1)
    feat = conv_bn.reshape(B, 14, 14, out_c).transpose(0, 3, 1, 2).reshape(B, -1)

    fc = fused_matmul(feat, params["fc_w_t"], bias=params["fc_b"])   # (B, 200)
    fc_pad = pallas_bn_act(fc, params["bn2_gamma"], params["bn2_beta"],
                           eps=1e-5, act="relu")                     # (Bp, 256)

    # sigmoid(fc @ all_ent^T + bias), entity-tiled fused Pallas kernel
    score = pallas_score(fc_pad, y_pad, params["score_bias"], B, num_ent)
    return score


# ----------------------------------------------------------------------------
if __name__ == "__main__":
    num_ent, num_rel, emb_dim = 16, 4, 100   # emb_dim=100 forced by ConvE's 20x20 reshape
    batch = 4

    key = jax.random.PRNGKey(0)
    params = init_params(key, num_ent, num_rel, emb_dim)

    # Small deterministic graph: 4 forward edges + their 4 reverse edges.
    src = jnp.array([0, 1, 2, 3, 4, 5, 6, 7], jnp.int32)
    dst = jnp.array([4, 5, 6, 7, 0, 1, 2, 3], jnp.int32)
    edge_type = jnp.array([0, 1, 0, 1, 2, 3, 2, 3], jnp.int32)   # second half = inverse rels
    edge_norm = jnp.full((8,), 0.5, jnp.float32)
    graph = {"src": src, "dst": dst, "edge_type": edge_type, "edge_norm": edge_norm}

    # triples (h, r, t)
    triples = jnp.array([[0, 0, 4],
                         [4, 1, 5],
                         [7, 2, 2],
                         [2, 3, 9]], jnp.int32)

    fwd = jax.jit(functools.partial(my_compgcn_forward, params))
    score = fwd(graph, triples)
    jax.block_until_ready(score)
    assert score.shape == (batch, num_ent)
    print("KERNEL_OK")
</pallas_src>

<mosaic_0001>
module attributes {stable_mosaic.version = 11 : i64} {
  func.func @_mm_kernel_single_k(%arg0: i32, %arg1: i32, %arg2: memref<8x128xbf16, #tpu.memory_space<vmem>>, %arg3: memref<128x256xbf16, #tpu.memory_space<vmem>>, %arg4: memref<1x256xf32, #tpu.memory_space<vmem>>, %arg5: memref<8x256xf32, #tpu.memory_space<vmem>>) attributes {dimension_semantics = [#tpu.dimension_semantics<parallel>, #tpu.dimension_semantics<parallel>], iteration_bounds = array<i64: 1, 1>, scalar_prefetch = 0 : i64, scratch_operands = 0 : i64, tpu.core_type = #tpu.core_type<tc>, window_params = [{transform_indices = @transform_0, window_bounds = array<i64: 8, 128>}, {transform_indices = @transform_1, window_bounds = array<i64: 128, 256>}, {transform_indices = @transform_2, window_bounds = array<i64: 1, 256>}, {transform_indices = @transform_3, window_bounds = array<i64: 8, 256>}]} {
    %c0 = arith.constant 0 : index
    %c0_0 = arith.constant 0 : index
    %0 = vector.load %arg2[%c0, %c0_0] : memref<8x128xbf16, #tpu.memory_space<vmem>>, vector<8x128xbf16>
    %c0_1 = arith.constant 0 : index
    %c0_2 = arith.constant 0 : index
    %1 = vector.load %arg3[%c0_1, %c0_2] : memref<128x256xbf16, #tpu.memory_space<vmem>>, vector<128x256xbf16>
    %cst = arith.constant dense<0.000000e+00> : vector<8x256xf32>
    %2 = tpu.matmul %0, %1, %cst {dimension_numbers = #tpu.dot_dimension_numbers<[1], [0], [0], [1], [0, 0, 1, 1], [], []>} : vector<8x128xbf16>, vector<128x256xbf16>, vector<8x256xf32> -> vector<8x256xf32>
    %c0_3 = arith.constant 0 : index
    %c0_4 = arith.constant 0 : index
    %3 = vector.load %arg4[%c0_3, %c0_4] : memref<1x256xf32, #tpu.memory_space<vmem>>, vector<1x256xf32>
    %4 = vector.broadcast %3 : vector<1x256xf32> to vector<8x256xf32>
    %5 = arith.addf %2, %4 : vector<8x256xf32>
    %c0_5 = arith.constant 0 : index
    %c0_6 = arith.constant 0 : index
    %6 = vector.load %arg5[%c0_5, %c0_6] : memref<8x256xf32, #tpu.memory_space<vmem>>, vector<8x256xf32>
    tpu.vector_store %arg5[%c0_5, %c0_6], %5 {strides = array<i32>} : memref<8x256xf32, #tpu.memory_space<vmem>>, vector<8x256xf32>,
    return
  }
  func.func @transform_0(%arg0: i32, %arg1: i32) -> (i32, i32) {
    %c0_i32 = arith.constant 0 : i32
    %c0_i32_0 = arith.constant 0 : i32
    return %arg0, %c0_i32 : i32, i32
  }
  func.func @transform_1(%arg0: i32, %arg1: i32) -> (i32, i32) {
    %c0_i32 = arith.constant 0 : i32
    %c0_i32_0 = arith.constant 0 : i32
    return %c0_i32, %arg1 : i32, i32
  }
  func.func @transform_2(%arg0: i32, %arg1: i32) -> (i32, i32) {
    %c0_i32 = arith.constant 0 : i32
    %c0_i32_0 = arith.constant 0 : i32
    return %c0_i32, %arg1 : i32, i32
  }
  func.func @transform_3(%arg0: i32, %arg1: i32) -> (i32, i32) {
    %c0_i32 = arith.constant 0 : i32
    return %arg0, %arg1 : i32, i32
  }
}

module attributes {stable_mosaic.version = 11 : i64} {
  func.func @_mm_kernel_single_k(%arg0: i32, %arg1: i32, %arg2: memref<16x128xbf16, #tpu.memory_space<vmem>>, %arg3: memref<128x256xbf16, #tpu.memory_space<vmem>>, %arg4: memref<1x256xf32, #tpu.memory_space<vmem>>, %arg5: memref<16x256xf32, #tpu.memory_space<vmem>>) attributes {dimension_semantics = [#tpu.dimension_semantics<parallel>, #tpu.dimension_semantics<parallel>], iteration_bounds = array<i64: 1, 1>, scalar_prefetch = 0 : i64, scratch_operands = 0 : i64, tpu.core_type = #tpu.core_type<tc>, window_params = [{transform_indices = @transform_0, window_bounds = array<i64: 16, 128>}, {transform_indices = @transform_1, window_bounds = array<i64: 128, 256>}, {transform_indices = @transform_2, window_bounds = array<i64: 1, 256>}, {transform_indices = @transform_3, window_bounds = array<i64: 16, 256>}]} {
    %c0 = arith.constant 0 : index
    %c0_0 = arith.constant 0 : index
    %0 = vector.load %arg2[%c0, %c0_0] : memref<16x128xbf16, #tpu.memory_space<vmem>>, vector<16x128xbf16>
    %c0_1 = arith.constant 0 : index
    %c0_2 = arith.constant 0 : index
    %1 = vector.load %arg3[%c0_1, %c0_2] : memref<128x256xbf16, #tpu.memory_space<vmem>>, vector<128x256xbf16>
    %cst = arith.constant dense<0.000000e+00> : vector<16x256xf32>
    %2 = tpu.matmul %0, %1, %cst {dimension_numbers = #tpu.dot_dimension_numbers<[1], [0], [0], [1], [0, 0, 1, 1], [], []>} : vector<16x128xbf16>, vector<128x256xbf16>, vector<16x256xf32> -> vector<16x256xf32>
    %c0_3 = arith.constant 0 : index
    %c0_4 = arith.constant 0 : index
    %3 = vector.load %arg4[%c0_3, %c0_4] : memref<1x256xf32, #tpu.memory_space<vmem>>, vector<1x256xf32>
    %cst_5 = arith.constant 0.333333343 : f32
    %4 = vector.broadcast %cst_5 : f32 to vector<16x256xf32>
    %5 = arith.mulf %2, %4 : vector<16x256xf32>
    %6 = vector.broadcast %3 : vector<1x256xf32> to vector<16x256xf32>
    %7 = arith.addf %5, %6 : vector<16x256xf32>
    %c0_6 = arith.constant 0 : index
    %c0_7 = arith.constant 0 : index
    %8 = vector.load %arg5[%c0_6, %c0_7] : memref<16x256xf32, #tpu.memory_space<vmem>>, vector<16x256xf32>
    tpu.vector_store %arg5[%c0_6, %c0_7], %7 {strides = array<i32>} : memref<16x256xf32, #tpu.memory_space<vmem>>, vector<16x256xf32>,
    return
  }
  func.func @transform_0(%arg0: i32, %arg1: i32) -> (i32, i32) {
    %c0_i32 = arith.constant 0 : i32
    %c0_i32_0 = arith.constant 0 : i32
    return %arg0, %c0_i32 : i32, i32
  }
  func.func @transform_1(%arg0: i32, %arg1: i32) -> (i32, i32) {
    %c0_i32 = arith.constant 0 : i32
    %c0_i32_0 = arith.constant 0 : i32
    return %c0_i32, %arg1 : i32, i32
  }
  func.func @transform_2(%arg0: i32, %arg1: i32) -> (i32, i32) {
    %c0_i32 = arith.constant 0 : i32
    %c0_i32_0 = arith.constant 0 : i32
    return %c0_i32, %arg1 : i32, i32
  }
  func.func @transform_3(%arg0: i32, %arg1: i32) -> (i32, i32) {
    %c0_i32 = arith.constant 0 : i32
    return %arg0, %arg1 : i32, i32
  }
}

module attributes {stable_mosaic.version = 11 : i64} {
  func.func @_affine_act_kernel(%arg0: i32, %arg1: memref<16x256xf32, #tpu.memory_space<vmem>>, %arg2: memref<1x256xf32, #tpu.memory_space<vmem>>, %arg3: memref<1x256xf32, #tpu.memory_space<vmem>>, %arg4: memref<16x256xf32, #tpu.memory_space<vmem>>) attributes {dimension_semantics = [#tpu.dimension_semantics<parallel>], iteration_bounds = array<i64: 1>, scalar_prefetch = 0 : i64, scratch_operands = 0 : i64, tpu.core_type = #tpu.core_type<tc>, window_params = [{transform_indices = @transform_0, window_bounds = array<i64: 16, 256>}, {pipeline_mode = #tpu.pipeline_mode<synchronous>, transform_indices = @transform_1, window_bounds = array<i64: 1, 256>}, {pipeline_mode = #tpu.pipeline_mode<synchronous>, transform_indices = @transform_2, window_bounds = array<i64: 1, 256>}, {transform_indices = @transform_3, window_bounds = array<i64: 16, 256>}]} {
    %c0 = arith.constant 0 : index
    %c0_0 = arith.constant 0 : index
    %0 = vector.load %arg1[%c0, %c0_0] : memref<16x256xf32, #tpu.memory_space<vmem>>, vector<16x256xf32>
    %c0_1 = arith.constant 0 : index
    %c0_2 = arith.constant 0 : index
    %1 = vector.load %arg2[%c0_1, %c0_2] : memref<1x256xf32, #tpu.memory_space<vmem>>, vector<1x256xf32>
    %2 = vector.broadcast %1 : vector<1x256xf32> to vector<16x256xf32>
    %3 = arith.mulf %0, %2 : vector<16x256xf32>
    %c0_3 = arith.constant 0 : index
    %c0_4 = arith.constant 0 : index
    %4 = vector.load %arg3[%c0_3, %c0_4] : memref<1x256xf32, #tpu.memory_space<vmem>>, vector<1x256xf32>
    %5 = vector.broadcast %4 : vector<1x256xf32> to vector<16x256xf32>
    %6 = arith.addf %3, %5 : vector<16x256xf32>
    %7 = math.tanh %6 : vector<16x256xf32>
    %c0_5 = arith.constant 0 : index
    %c0_6 = arith.constant 0 : index
    %8 = vector.load %arg4[%c0_5, %c0_6] : memref<16x256xf32, #tpu.memory_space<vmem>>, vector<16x256xf32>
    tpu.vector_store %arg4[%c0_5, %c0_6], %7 {strides = array<i32>} : memref<16x256xf32, #tpu.memory_space<vmem>>, vector<16x256xf32>,
    return
  }
  func.func @transform_0(%arg0: i32) -> (i32, i32) {
    %c0_i32 = arith.constant 0 : i32
    %c0_i32_0 = arith.constant 0 : i32
    return %arg0, %c0_i32 : i32, i32
  }
  func.func @transform_1(%arg0: i32) -> (i32, i32) {
    %c0_i32 = arith.constant 0 : i32
    %c0_i32_0 = arith.constant 0 : i32
    %c0_i32_1 = arith.constant 0 : i32
    return %c0_i32, %c0_i32_0 : i32, i32
  }
  func.func @transform_2(%arg0: i32) -> (i32, i32) {
    %c0_i32 = arith.constant 0 : i32
    %c0_i32_0 = arith.constant 0 : i32
    %c0_i32_1 = arith.constant 0 : i32
    return %c0_i32, %c0_i32_0 : i32, i32
  }
  func.func @transform_3(%arg0: i32) -> (i32, i32) {
    %c0_i32 = arith.constant 0 : i32
    %c0_i32_0 = arith.constant 0 : i32
    return %arg0, %c0_i32 : i32, i32
  }
}

module attributes {stable_mosaic.version = 11 : i64} {
  func.func @_mm_kernel_single_k(%arg0: i32, %arg1: i32, %arg2: memref<8x128xbf16, #tpu.memory_space<vmem>>, %arg3: memref<128x256xbf16, #tpu.memory_space<vmem>>, %arg4: memref<1x256xf32, #tpu.memory_space<vmem>>, %arg5: memref<8x256xf32, #tpu.memory_space<vmem>>) attributes {dimension_semantics = [#tpu.dimension_semantics<parallel>, #tpu.dimension_semantics<parallel>], iteration_bounds = array<i64: 1, 1>, scalar_prefetch = 0 : i64, scratch_operands = 0 : i64, tpu.core_type = #tpu.core_type<tc>, window_params = [{transform_indices = @transform_0, window_bounds = array<i64: 8, 128>}, {transform_indices = @transform_1, window_bounds = array<i64: 128, 256>}, {transform_indices = @transform_2, window_bounds = array<i64: 1, 256>}, {transform_indices = @transform_3, window_bounds = array<i64: 8, 256>}]} {
    %c0 = arith.constant 0 : index
    %c0_0 = arith.constant 0 : index
    %0 = vector.load %arg2[%c0, %c0_0] : memref<8x128xbf16, #tpu.memory_space<vmem>>, vector<8x128xbf16>
    %c0_1 = arith.constant 0 : index
    %c0_2 = arith.constant 0 : index
    %1 = vector.load %arg3[%c0_1, %c0_2] : memref<128x256xbf16, #tpu.memory_space<vmem>>, vector<128x256xbf16>
    %cst = arith.constant dense<0.000000e+00> : vector<8x256xf32>
    %2 = tpu.matmul %0, %1, %cst {dimension_numbers = #tpu.dot_dimension_numbers<[1], [0], [0], [1], [0, 0, 1, 1], [], []>} : vector<8x128xbf16>, vector<128x256xbf16>, vector<8x256xf32> -> vector<8x256xf32>
    %c0_3 = arith.constant 0 : index
    %c0_4 = arith.constant 0 : index
    %3 = vector.load %arg4[%c0_3, %c0_4] : memref<1x256xf32, #tpu.memory_space<vmem>>, vector<1x256xf32>
    %4 = vector.broadcast %3 : vector<1x256xf32> to vector<8x256xf32>
    %5 = arith.addf %2, %4 : vector<8x256xf32>
    %c0_5 = arith.constant 0 : index
    %c0_6 = arith.constant 0 : index
    %6 = vector.load %arg5[%c0_5, %c0_6] : memref<8x256xf32, #tpu.memory_space<vmem>>, vector<8x256xf32>
    tpu.vector_store %arg5[%c0_5, %c0_6], %5 {strides = array<i32>} : memref<8x256xf32, #tpu.memory_space<vmem>>, vector<8x256xf32>,
    return
  }
  func.func @transform_0(%arg0: i32, %arg1: i32) -> (i32, i32) {
    %c0_i32 = arith.constant 0 : i32
    %c0_i32_0 = arith.constant 0 : i32
    return %arg0, %c0_i32 : i32, i32
  }
  func.func @transform_1(%arg0: i32, %arg1: i32) -> (i32, i32) {
    %c0_i32 = arith.constant 0 : i32
    %c0_i32_0 = arith.constant 0 : i32
    return %c0_i32, %arg1 : i32, i32
  }
  func.func @transform_2(%arg0: i32, %arg1: i32) -> (i32, i32) {
    %c0_i32 = arith.constant 0 : i32
    %c0_i32_0 = arith.constant 0 : i32
    return %c0_i32, %arg1 : i32, i32
  }
  func.func @transform_3(%arg0: i32, %arg1: i32) -> (i32, i32) {
    %c0_i32 = arith.constant 0 : i32
    return %arg0, %arg1 : i32, i32
  }
}

module attributes {stable_mosaic.version = 11 : i64} {
  func.func @_mm_kernel_single_k(%arg0: i32, %arg1: i32, %arg2: memref<256x128xbf16, #tpu.memory_space<vmem>>, %arg3: memref<128x256xbf16, #tpu.memory_space<vmem>>, %arg4: memref<1x256xf32, #tpu.memory_space<vmem>>, %arg5: memref<256x256xf32, #tpu.memory_space<vmem>>) attributes {dimension_semantics = [#tpu.dimension_semantics<parallel>, #tpu.dimension_semantics<parallel>], iteration_bounds = array<i64: 4, 1>, scalar_prefetch = 0 : i64, scratch_operands = 0 : i64, tpu.core_type = #tpu.core_type<tc>, window_params = [{transform_indices = @transform_0, window_bounds = array<i64: 256, 128>}, {transform_indices = @transform_1, window_bounds = array<i64: 128, 256>}, {transform_indices = @transform_2, window_bounds = array<i64: 1, 256>}, {transform_indices = @transform_3, window_bounds = array<i64: 256, 256>}]} {
    %c0 = arith.constant 0 : index
    %c0_0 = arith.constant 0 : index
    %0 = vector.load %arg2[%c0, %c0_0] : memref<256x128xbf16, #tpu.memory_space<vmem>>, vector<256x128xbf16>
    %c0_1 = arith.constant 0 : index
    %c0_2 = arith.constant 0 : index
    %1 = vector.load %arg3[%c0_1, %c0_2] : memref<128x256xbf16, #tpu.memory_space<vmem>>, vector<128x256xbf16>
    %cst = arith.constant dense<0.000000e+00> : vector<256x256xf32>
    %2 = tpu.matmul %0, %1, %cst {dimension_numbers = #tpu.dot_dimension_numbers<[1], [0], [0], [1], [0, 0, 1, 1], [], []>} : vector<256x128xbf16>, vector<128x256xbf16>, vector<256x256xf32> -> vector<256x256xf32>
    %c0_3 = arith.constant 0 : index
    %c0_4 = arith.constant 0 : index
    %3 = vector.load %arg4[%c0_3, %c0_4] : memref<1x256xf32, #tpu.memory_space<vmem>>, vector<1x256xf32>
    %4 = vector.broadcast %3 : vector<1x256xf32> to vector<256x256xf32>
    %5 = arith.addf %2, %4 : vector<256x256xf32>
    %c0_5 = arith.constant 0 : index
    %c0_6 = arith.constant 0 : index
    %6 = vector.load %arg5[%c0_5, %c0_6] : memref<256x256xf32, #tpu.memory_space<vmem>>, vector<256x256xf32>
    tpu.vector_store %arg5[%c0_5, %c0_6], %5 {strides = array<i32>} : memref<256x256xf32, #tpu.memory_space<vmem>>, vector<256x256xf32>,
    return
  }
  func.func @transform_0(%arg0: i32, %arg1: i32) -> (i32, i32) {
    %c0_i32 = arith.constant 0 : i32
    %c0_i32_0 = arith.constant 0 : i32
    return %arg0, %c0_i32 : i32, i32
  }
  func.func @transform_1(%arg0: i32, %arg1: i32) -> (i32, i32) {
    %c0_i32 = arith.constant 0 : i32
    %c0_i32_0 = arith.constant 0 : i32
    return %c0_i32, %arg1 : i32, i32
  }
  func.func @transform_2(%arg0: i32, %arg1: i32) -> (i32, i32) {
    %c0_i32 = arith.constant 0 : i32
    %c0_i32_0 = arith.constant 0 : i32
    return %c0_i32, %arg1 : i32, i32
  }
  func.func @transform_3(%arg0: i32, %arg1: i32) -> (i32, i32) {
    %c0_i32 = arith.constant 0 : i32
    return %arg0, %arg1 : i32, i32
  }
}

module attributes {stable_mosaic.version = 11 : i64} {
  func.func @_affine_act_kernel(%arg0: i32, %arg1: memref<512x256xf32, #tpu.memory_space<vmem>>, %arg2: memref<1x256xf32, #tpu.memory_space<vmem>>, %arg3: memref<1x256xf32, #tpu.memory_space<vmem>>, %arg4: memref<512x256xf32, #tpu.memory_space<vmem>>) attributes {dimension_semantics = [#tpu.dimension_semantics<parallel>], iteration_bounds = array<i64: 2>, scalar_prefetch = 0 : i64, scratch_operands = 0 : i64, tpu.core_type = #tpu.core_type<tc>, window_params = [{transform_indices = @transform_0, window_bounds = array<i64: 512, 256>}, {pipeline_mode = #tpu.pipeline_mode<synchronous>, transform_indices = @transform_1, window_bounds = array<i64: 1, 256>}, {pipeline_mode = #tpu.pipeline_mode<synchronous>, transform_indices = @transform_2, window_bounds = array<i64: 1, 256>}, {transform_indices = @transform_3, window_bounds = array<i64: 512, 256>}]} {
    %c0 = arith.constant 0 : index
    %c0_0 = arith.constant 0 : index
    %0 = vector.load %arg1[%c0, %c0_0] : memref<512x256xf32, #tpu.memory_space<vmem>>, vector<512x256xf32>
    %c0_1 = arith.constant 0 : index
    %c0_2 = arith.constant 0 : index
    %1 = vector.load %arg2[%c0_1, %c0_2] : memref<1x256xf32, #tpu.memory_space<vmem>>, vector<1x256xf32>
    %2 = vector.broadcast %1 : vector<1x256xf32> to vector<512x256xf32>
    %3 = arith.mulf %0, %2 : vector<512x256xf32>
    %c0_3 = arith.constant 0 : index
    %c0_4 = arith.constant 0 : index
    %4 = vector.load %arg3[%c0_3, %c0_4] : memref<1x256xf32, #tpu.memory_space<vmem>>, vector<1x256xf32>
    %5 = vector.broadcast %4 : vector<1x256xf32> to vector<512x256xf32>
    %6 = arith.addf %3, %5 : vector<512x256xf32>
    %cst = arith.constant 0.000000e+00 : f32
    %7 = vector.broadcast %cst : f32 to vector<512x256xf32>
    %8 = arith.maximumf %6, %7 : vector<512x256xf32>
    %c0_5 = arith.constant 0 : index
    %c0_6 = arith.constant 0 : index
    %9 = vector.load %arg4[%c0_5, %c0_6] : memref<512x256xf32, #tpu.memory_space<vmem>>, vector<512x256xf32>
    tpu.vector_store %arg4[%c0_5, %c0_6], %8 {strides = array<i32>} : memref<512x256xf32, #tpu.memory_space<vmem>>, vector<512x256xf32>,
    return
  }
  func.func @transform_0(%arg0: i32) -> (i32, i32) {
    %c0_i32 = arith.constant 0 : i32
    %c0_i32_0 = arith.constant 0 : i32
    return %arg0, %c0_i32 : i32, i32
  }
  func.func @transform_1(%arg0: i32) -> (i32, i32) {
    %c0_i32 = arith.constant 0 : i32
    %c0_i32_0 = arith.constant 0 : i32
    %c0_i32_1 = arith.constant 0 : i32
    return %c0_i32, %c0_i32_0 : i32, i32
  }
  func.func @transform_2(%arg0: i32) -> (i32, i32) {
    %c0_i32 = arith.constant 0 : i32
    %c0_i32_0 = arith.constant 0 : i32
    %c0_i32_1 = arith.constant 0 : i32
    return %c0_i32, %c0_i32_0 : i32, i32
  }
  func.func @transform_3(%arg0: i32) -> (i32, i32) {
    %c0_i32 = arith.constant 0 : i32
    %c0_i32_0 = arith.constant 0 : i32
    return %arg0, %c0_i32 : i32, i32
  }
}

module attributes {stable_mosaic.version = 11 : i64} {
  func.func @_mm_kernel_multi_k(%arg0: i32, %arg1: i32, %arg2: i32, %arg3: memref<8x512xbf16, #tpu.memory_space<vmem>>, %arg4: memref<512x256xbf16, #tpu.memory_space<vmem>>, %arg5: memref<1x256xf32, #tpu.memory_space<vmem>>, %arg6: memref<8x256xf32, #tpu.memory_space<vmem>>) attributes {dimension_semantics = [#tpu.dimension_semantics<parallel>, #tpu.dimension_semantics<parallel>, #tpu.dimension_semantics<arbitrary>], iteration_bounds = array<i64: 1, 1, 77>, scalar_prefetch = 0 : i64, scratch_operands = 0 : i64, tpu.core_type = #tpu.core_type<tc>, window_params = [{transform_indices = @transform_0, window_bounds = array<i64: 8, 512>}, {transform_indices = @transform_1, window_bounds = array<i64: 512, 256>}, {transform_indices = @transform_2, window_bounds = array<i64: 1, 256>}, {transform_indices = @transform_3, window_bounds = array<i64: 8, 256>}]} {
    %c0_i32 = arith.constant 0 : i32
    %0 = arith.cmpi eq, %arg2, %c0_i32 : i32
    %1 = arith.extui %0 : i1 to i32
    %c0_i32_0 = arith.constant 0 : i32
    %2 = arith.cmpi ne, %1, %c0_i32_0 : i32
    scf.if %2 {
      %cst_9 = arith.constant 0.000000e+00 : f32
      %12 = vector.broadcast %cst_9 : f32 to vector<8x256xf32>
      %c0_10 = arith.constant 0 : index
      %c0_11 = arith.constant 0 : index
      %13 = vector.load %arg6[%c0_10, %c0_11] : memref<8x256xf32, #tpu.memory_space<vmem>>, vector<8x256xf32>
      tpu.vector_store %arg6[%c0_10, %c0_11], %12 {strides = array<i32>} : memref<8x256xf32, #tpu.memory_space<vmem>>, vector<8x256xf32>,
    } else {
    }
    %c0 = arith.constant 0 : index
    %c0_1 = arith.constant 0 : index
    %3 = vector.load %arg6[%c0, %c0_1] : memref<8x256xf32, #tpu.memory_space<vmem>>, vector<8x256xf32>
    %c0_2 = arith.constant 0 : index
    %c0_3 = arith.constant 0 : index
    %4 = vector.load %arg3[%c0_2, %c0_3] : memref<8x512xbf16, #tpu.memory_space<vmem>>, vector<8x512xbf16>
    %c0_4 = arith.constant 0 : index
    %c0_5 = arith.constant 0 : index
    %5 = vector.load %arg4[%c0_4, %c0_5] : memref<512x256xbf16, #tpu.memory_space<vmem>>, vector<512x256xbf16>
    %cst = arith.constant dense<0.000000e+00> : vector<8x256xf32>
    %6 = tpu.matmul %4, %5, %cst {dimension_numbers = #tpu.dot_dimension_numbers<[1], [0], [0], [1], [0, 0, 1, 1], [], []>} : vector<8x512xbf16>, vector<512x256xbf16>, vector<8x256xf32> -> vector<8x256xf32>
    %7 = arith.addf %3, %6 : vector<8x256xf32>
    %c0_6 = arith.constant 0 : index
    %c0_7 = arith.constant 0 : index
    %8 = vector.load %arg6[%c0_6, %c0_7] : memref<8x256xf32, #tpu.memory_space<vmem>>, vector<8x256xf32>
    tpu.vector_store %arg6[%c0_6, %c0_7], %7 {strides = array<i32>} : memref<8x256xf32, #tpu.memory_space<vmem>>, vector<8x256xf32>,
    %c76_i32 = arith.constant 76 : i32
    %9 = arith.cmpi eq, %arg2, %c76_i32 : i32
    %10 = arith.extui %9 : i1 to i32
    %c0_i32_8 = arith.constant 0 : i32
    %11 = arith.cmpi ne, %10, %c0_i32_8 : i32
    scf.if %11 {
      %c0_9 = arith.constant 0 : index
      %c0_10 = arith.constant 0 : index
      %12 = vector.load %arg6[%c0_9, %c0_10] : memref<8x256xf32, #tpu.memory_space<vmem>>, vector<8x256xf32>
      %c0_11 = arith.constant 0 : index
      %c0_12 = arith.constant 0 : index
      %13 = vector.load %arg5[%c0_11, %c0_12] : memref<1x256xf32, #tpu.memory_space<vmem>>, vector<1x256xf32>
      %14 = vector.broadcast %13 : vector<1x256xf32> to vector<8x256xf32>
      %15 = arith.addf %12, %14 : vector<8x256xf32>
      %c0_13 = arith.constant 0 : index
      %c0_14 = arith.constant 0 : index
      %16 = vector.load %arg6[%c0_13, %c0_14] : memref<8x256xf32, #tpu.memory_space<vmem>>, vector<8x256xf32>
      tpu.vector_store %arg6[%c0_13, %c0_14], %15 {strides = array<i32>} : memref<8x256xf32, #tpu.memory_space<vmem>>, vector<8x256xf32>,
    } else {
    }
    return
  }
  func.func @transform_0(%arg0: i32, %arg1: i32, %arg2: i32) -> (i32, i32) {
    %c0_i32 = arith.constant 0 : i32
    return %arg0, %arg2 : i32, i32
  }
  func.func @transform_1(%arg0: i32, %arg1: i32, %arg2: i32) -> (i32, i32) {
    %c0_i32 = arith.constant 0 : i32
    return %arg2, %arg1 : i32, i32
  }
  func.func @transform_2(%arg0: i32, %arg1: i32, %arg2: i32) -> (i32, i32) {
    %c0_i32 = arith.constant 0 : i32
    %c0_i32_0 = arith.constant 0 : i32
    return %c0_i32, %arg1 : i32, i32
  }
  func.func @transform_3(%arg0: i32, %arg1: i32, %arg2: i32) -> (i32, i32) {
    %c0_i32 = arith.constant 0 : i32
    return %arg0, %arg1 : i32, i32
  }
}

module attributes {stable_mosaic.version = 11 : i64} {
  func.func @_affine_act_kernel(%arg0: i32, %arg1: memref<8x256xf32, #tpu.memory_space<vmem>>, %arg2: memref<1x256xf32, #tpu.memory_space<vmem>>, %arg3: memref<1x256xf32, #tpu.memory_space<vmem>>, %arg4: memref<8x256xf32, #tpu.memory_space<vmem>>) attributes {dimension_semantics = [#tpu.dimension_semantics<parallel>], iteration_bounds = array<i64: 1>, scalar_prefetch = 0 : i64, scratch_operands = 0 : i64, tpu.core_type = #tpu.core_type<tc>, window_params = [{transform_indices = @transform_0, window_bounds = array<i64: 8, 256>}, {pipeline_mode = #tpu.pipeline_mode<synchronous>, transform_indices = @transform_1, window_bounds = array<i64: 1, 256>}, {pipeline_mode = #tpu.pipeline_mode<synchronous>, transform_indices = @transform_2, window_bounds = array<i64: 1, 256>}, {transform_indices = @transform_3, window_bounds = array<i64: 8, 256>}]} {
    %c0 = arith.constant 0 : index
    %c0_0 = arith.constant 0 : index
    %0 = vector.load %arg1[%c0, %c0_0] : memref<8x256xf32, #tpu.memory_space<vmem>>, vector<8x256xf32>
    %c0_1 = arith.constant 0 : index
    %c0_2 = arith.constant 0 : index
    %1 = vector.load %arg2[%c0_1, %c0_2] : memref<1x256xf32, #tpu.memory_space<vmem>>, vector<1x256xf32>
    %2 = vector.broadcast %1 : vector<1x256xf32> to vector<8x256xf32>
    %3 = arith.mulf %0, %2 : vector<8x256xf32>
    %c0_3 = arith.constant 0 : index
    %c0_4 = arith.constant 0 : index
    %4 = vector.load %arg3[%c0_3, %c0_4] : memref<1x256xf32, #tpu.memory_space<vmem>>, vector<1x256xf32>
    %5 = vector.broadcast %4 : vector<1x256xf32> to vector<8x256xf32>
    %6 = arith.addf %3, %5 : vector<8x256xf32>
    %cst = arith.constant 0.000000e+00 : f32
    %7 = vector.broadcast %cst : f32 to vector<8x256xf32>
    %8 = arith.maximumf %6, %7 : vector<8x256xf32>
    %c0_5 = arith.constant 0 : index
    %c0_6 = arith.constant 0 : index
    %9 = vector.load %arg4[%c0_5, %c0_6] : memref<8x256xf32, #tpu.memory_space<vmem>>, vector<8x256xf32>
    tpu.vector_store %arg4[%c0_5, %c0_6], %8 {strides = array<i32>} : memref<8x256xf32, #tpu.memory_space<vmem>>, vector<8x256xf32>,
    return
  }
  func.func @transform_0(%arg0: i32) -> (i32, i32) {
    %c0_i32 = arith.constant 0 : i32
    %c0_i32_0 = arith.constant 0 : i32
    return %arg0, %c0_i32 : i32, i32
  }
  func.func @transform_1(%arg0: i32) -> (i32, i32) {
    %c0_i32 = arith.constant 0 : i32
    %c0_i32_0 = arith.constant 0 : i32
    %c0_i32_1 = arith.constant 0 : i32
    return %c0_i32, %c0_i32_0 : i32, i32
  }
  func.func @transform_2(%arg0: i32) -> (i32, i32) {
    %c0_i32 = arith.constant 0 : i32
    %c0_i32_0 = arith.constant 0 : i32
    %c0_i32_1 = arith.constant 0 : i32
    return %c0_i32, %c0_i32_0 : i32, i32
  }
  func.func @transform_3(%arg0: i32) -> (i32, i32) {
    %c0_i32 = arith.constant 0 : i32
    %c0_i32_0 = arith.constant 0 : i32
    return %arg0, %c0_i32 : i32, i32
  }
}

module attributes {stable_mosaic.version = 11 : i64} {
  func.func @_score_kernel(%arg0: i32, %arg1: memref<8x256xbf16, #tpu.memory_space<vmem>>, %arg2: memref<128x256xbf16, #tpu.memory_space<vmem>>, %arg3: memref<1x128xf32, #tpu.memory_space<vmem>>, %arg4: memref<8x128xf32, #tpu.memory_space<vmem>>) attributes {dimension_semantics = [#tpu.dimension_semantics<parallel>], iteration_bounds = array<i64: 1>, scalar_prefetch = 0 : i64, scratch_operands = 0 : i64, tpu.core_type = #tpu.core_type<tc>, window_params = [{pipeline_mode = #tpu.pipeline_mode<synchronous>, transform_indices = @transform_0, window_bounds = array<i64: 8, 256>}, {transform_indices = @transform_1, window_bounds = array<i64: 128, 256>}, {transform_indices = @transform_2, window_bounds = array<i64: 1, 128>}, {transform_indices = @transform_3, window_bounds = array<i64: 8, 128>}]} {
    %c0 = arith.constant 0 : index
    %c0_0 = arith.constant 0 : index
    %0 = vector.load %arg1[%c0, %c0_0] : memref<8x256xbf16, #tpu.memory_space<vmem>>, vector<8x256xbf16>
    %c0_1 = arith.constant 0 : index
    %c0_2 = arith.constant 0 : index
    %1 = vector.load %arg2[%c0_1, %c0_2] : memref<128x256xbf16, #tpu.memory_space<vmem>>, vector<128x256xbf16>
    %cst = arith.constant dense<0.000000e+00> : vector<8x128xf32>
    %2 = tpu.matmul %0, %1, %cst {dimension_numbers = #tpu.dot_dimension_numbers<[1], [1], [0], [0], [0, 0, 1, 0], [], []>} : vector<8x256xbf16>, vector<128x256xbf16>, vector<8x128xf32> -> vector<8x128xf32>
    %c0_3 = arith.constant 0 : index
    %c0_4 = arith.constant 0 : index
    %3 = vector.load %arg3[%c0_3, %c0_4] : memref<1x128xf32, #tpu.memory_space<vmem>>, vector<1x128xf32>
    %4 = vector.broadcast %3 : vector<1x128xf32> to vector<8x128xf32>
    %5 = arith.addf %2, %4 : vector<8x128xf32>
    %6 = arith.negf %5 : vector<8x128xf32>
    %7 = math.exp %6 : vector<8x128xf32>
    %cst_5 = arith.constant 1.000000e+00 : f32
    %8 = vector.broadcast %cst_5 : f32 to vector<8x128xf32>
    %9 = arith.addf %8, %7 : vector<8x128xf32>
    %10 = arith.divf %8, %9 : vector<8x128xf32>
    %c0_6 = arith.constant 0 : index
    %c0_7 = arith.constant 0 : index
    %11 = vector.load %arg4[%c0_6, %c0_7] : memref<8x128xf32, #tpu.memory_space<vmem>>, vector<8x128xf32>
    tpu.vector_store %arg4[%c0_6, %c0_7], %10 {strides = array<i32>} : memref<8x128xf32, #tpu.memory_space<vmem>>, vector<8x128xf32>,
    return
  }
  func.func @transform_0(%arg0: i32) -> (i32, i32) {
    %c0_i32 = arith.constant 0 : i32
    %c0_i32_0 = arith.constant 0 : i32
    %c0_i32_1 = arith.constant 0 : i32
    return %c0_i32, %c0_i32_0 : i32, i32
  }
  func.func @transform_1(%arg0: i32) -> (i32, i32) {
    %c0_i32 = arith.constant 0 : i32
    %c0_i32_0 = arith.constant 0 : i32
    return %arg0, %c0_i32 : i32, i32
  }
  func.func @transform_2(%arg0: i32) -> (i32, i32) {
    %c0_i32 = arith.constant 0 : i32
    %c0_i32_0 = arith.constant 0 : i32
    return %c0_i32, %arg0 : i32, i32
  }
  func.func @transform_3(%arg0: i32) -> (i32, i32) {
    %c0_i32 = arith.constant 0 : i32
    %c0_i32_0 = arith.constant 0 : i32
    return %c0_i32, %arg0 : i32, i32
  }
}

</mosaic_0001>

<bundles_post_ra>
// kernel: custom-call.6
= control target key start
LH: loop header
LB: loop body
LE: loop exit
PB: predicated region body
PF: predicated region fallthrough
CT: control target
= control target key end

     0   :  { %s6_s0 = inlined_call_operand.vmem [shape: f32[4,200], index: 0, kind: output, shape index: {}]  }

// kernel: my_compgcn_forward.10
= control target key start
LH: loop header
LB: loop body
LE: loop exit
PB: predicated region body
PF: predicated region fallthrough
CT: control target
= control target key end

     0   :  { %v212_v1 = vmov 0   ;;  %v34_v18 = vlaneseq  ;;  %s293_s1 = inlined_call_operand.vmem [shape: bf16[128,256], index: 1, kind: input, shape index: {}]   ;;  %s294_s0 = inlined_call_operand.vmem [shape: bf16[8,128], index: 0, kind: input, shape index: {}]   ;;  %s295_s2 = inlined_call_operand.vmem [shape: f32[1,256], index: 2, kind: input, shape index: {}]   ;;  %s296_s3 = inlined_call_operand.vmem [shape: f32[8,256], index: 3, kind: output, shape index: {}]  }
   0x1   :  { %v188_v0 = vld [vmem:[%s293_s1 + $0x4] ss:$8 sps:$4 sm:$0xff]   ;;  %156 = vmatprep.mubr.bf16.mxu0 %v212_v1  ;;  %v190_v2 = vld [vmem:[%s293_s1] ss:$8 sps:$4 sm:$0xff]   ;;  %v191_v3 = vld [vmem:[%s293_s1 + $0x14] ss:$8 sps:$4 sm:$0xff]  }
   0x2   :  { %124 = vmatprep.subr.bf16.mxu0 %v188_v0  ;;  %v193_v4 = vld [vmem:[%s293_s1 + $0x10] ss:$8 sps:$4 sm:$0xff]   ;;  %v194_v5 = vld [vmem:[%s293_s1 + $0x24] ss:$8 sps:$4 sm:$0xff]   ;;  %v196_v6 = vld [vmem:[%s293_s1 + $0x20] ss:$8 sps:$4 sm:$0xff]  }
   0x3   :  { %125 = vmatpush1.bf16.msra.mxu0 %v190_v2  ;;  %v197_v7 = vld [vmem:[%s293_s1 + $0x34] ss:$8 sps:$4 sm:$0xff]   ;;  %v199_v8 = vld [vmem:[%s293_s1 + $0x30] ss:$8 sps:$4 sm:$0xff]   ;;  %v200_v9 = vld [vmem:[%s293_s1 + $0x44] ss:$8 sps:$4 sm:$0xff]  }
   0x4   :  { %126 = vmatprep.subr.bf16.mxu0 %v191_v3  ;;  %v202_v10 = vld [vmem:[%s293_s1 + $0x40] ss:$8 sps:$4 sm:$0xff]   ;;  %v203_v11 = vld [vmem:[%s293_s1 + $0x54] ss:$8 sps:$4 sm:$0xff]   ;;  %v205_v12 = vld [vmem:[%s293_s1 + $0x50] ss:$8 sps:$4 sm:$0xff]  }
   0x5   :  { %v206_v13 = vld [vmem:[%s293_s1 + $0x64] ss:$8 sps:$4 sm:$0xff]   ;;  %v208_v14 = vld [vmem:[%s293_s1 + $0x60] ss:$8 sps:$4 sm:$0xff]   ;;  %v209_v15 = vld [vmem:[%s293_s1 + $0x74] ss:$8 sps:$4 sm:$0xff]  }
   0x6   :  { %v211_v16 = vld [vmem:[%s293_s1 + $0x70] ss:$8 sps:$4 sm:$0xff]   ;;  %v15_v17 = vld [vmem:[%s294_s0] sm:$0xf]  ;;  %v35_v19 = vshrl.u32 %v34_v18, 7 }
   0x7   :  { %127 = vmatpush1.bf16.msra.mxu0 %v193_v4  ;;  %v32_v21 = vld [vmem:[%s295_s2] sm:$0x3] }
   0x8   :  { %128 = vmatprep.subr.bf16.mxu0 %v194_v5  ;;  %v36_v20 = vsub.s32 0, %v35_v19  ;;  %v40_v22 = vsub.s32 1, %v35_v19 }
   0xa   :  { %v37_v23 = vrot.slane %v32_v21, %v36_v20  ;;  %v41_v24 = vrot.slane %v32_v21, %v40_v22 }
   0xb   :  { %129 = vmatpush1.bf16.msra.mxu0 %v196_v6 }
   0xc   :  { %130 = vmatprep.subr.bf16.mxu0 %v197_v7 }
   0xf   :  { %131 = vmatpush1.bf16.msra.mxu0 %v199_v8 }
  0x10   :  { %132 = vmatprep.subr.bf16.mxu0 %v200_v9 }
  0x13   :  { %133 = vmatpush1.bf16.msra.mxu0 %v202_v10 }
  0x14   :  { %134 = vmatprep.subr.bf16.mxu0 %v203_v11 }
  0x17   :  { %135 = vmatpush1.bf16.msra.mxu0 %v205_v12 }
  0x18   :  { %136 = vmatprep.subr.bf16.mxu0 %v206_v13 }
  0x1b   :  { %137 = vmatpush1.bf16.msra.mxu0 %v208_v14 }
  0x1c   :  { %138 = vmatprep.subr.bf16.mxu0 %v209_v15 }
  0x1f   :  { %139 = vmatpush1.bf16.msra.mxu0 %v211_v16 }
  0x22   :  { %157 = vmatmul.mubr.bf16.vlgmr.msra.gmra.mrb[0].mxu0 %v15_v17 }
  0xf5   :  { %v158_v25 = vpop.f32.mrb[0].mxu0 }
  0xf6   :  { %v159_v26 = vadd.f32 %v158_v25, %v37_v23  ;;  %v160_v27 = vpop.f32.mrb[1].mxu0 }
  0xf7   :  { %v161_v28 = vadd.f32 %v160_v27, %v41_v24  ;;  %v162_v29 = vpop.f32.mrb[2].mxu0 }
  0xf8   :  { %165 = vst [vmem:[%s296_s3] sm:$0xff] %v159_v26  ;;  %v163_v30 = vpop.f32.mrb[3].mxu0 }
  0xf9   :  { %166 = vst [vmem:[%s296_s3 + $0x8] sm:$0xff] %v161_v28 }

// kernel: my_compgcn_forward.12
= control target key start
LH: loop header
LB: loop body
LE: loop exit
PB: predicated region body
PF: predicated region fallthrough
CT: control target
= control target key end

     0   :  { %v233_v1 = vmov 0   ;;  %v168_v18 = vlaneseq  ;;  %s320_s1 = inlined_call_operand.vmem [shape: bf16[128,256], index: 1, kind: input, shape index: {}]   ;;  %s321_s0 = inlined_call_operand.vmem [shape: bf16[16,128], index: 0, kind: input, shape index: {}]   ;;  %s322_s2 = inlined_call_operand.vmem [shape: f32[1,256], index: 2, kind: input, shape index: {}]   ;;  %s323_s3 = inlined_call_operand.vmem [shape: f32[16,256], index: 3, kind: output, shape index: {}]  }
   0x1   :  { %v208_v0 = vld [vmem:[%s320_s1 + $0x4] ss:$8 sps:$4 sm:$0xff]   ;;  %151 = vmatprep.mubr.bf16.mxu0 %v233_v1  ;;  %v210_v2 = vld [vmem:[%s320_s1] ss:$8 sps:$4 sm:$0xff]   ;;  %v211_v3 = vld [vmem:[%s320_s1 + $0x14] ss:$8 sps:$4 sm:$0xff]  }
   0x2   :  { %119 = vmatprep.subr.bf16.mxu0 %v208_v0  ;;  %v213_v4 = vld [vmem:[%s320_s1 + $0x10] ss:$8 sps:$4 sm:$0xff]   ;;  %v214_v5 = vld [vmem:[%s320_s1 + $0x24] ss:$8 sps:$4 sm:$0xff]   ;;  %v216_v6 = vld [vmem:[%s320_s1 + $0x20] ss:$8 sps:$4 sm:$0xff]  }
   0x3   :  { %120 = vmatpush1.bf16.msra.mxu0 %v210_v2  ;;  %v217_v7 = vld [vmem:[%s320_s1 + $0x34] ss:$8 sps:$4 sm:$0xff]   ;;  %v219_v8 = vld [vmem:[%s320_s1 + $0x30] ss:$8 sps:$4 sm:$0xff]   ;;  %v220_v9 = vld [vmem:[%s320_s1 + $0x44] ss:$8 sps:$4 sm:$0xff]  }
   0x4   :  { %121 = vmatprep.subr.bf16.mxu0 %v211_v3  ;;  %v222_v10 = vld [vmem:[%s320_s1 + $0x40] ss:$8 sps:$4 sm:$0xff]   ;;  %v223_v11 = vld [vmem:[%s320_s1 + $0x54] ss:$8 sps:$4 sm:$0xff]   ;;  %v225_v12 = vld [vmem:[%s320_s1 + $0x50] ss:$8 sps:$4 sm:$0xff]  }
   0x5   :  { %v226_v13 = vld [vmem:[%s320_s1 + $0x64] ss:$8 sps:$4 sm:$0xff]   ;;  %v228_v14 = vld [vmem:[%s320_s1 + $0x60] ss:$8 sps:$4 sm:$0xff]   ;;  %v229_v15 = vld [vmem:[%s320_s1 + $0x74] ss:$8 sps:$4 sm:$0xff]  }
   0x6   :  { %v231_v16 = vld [vmem:[%s320_s1 + $0x70] ss:$8 sps:$4 sm:$0xff]   ;;  %v232_v17 = vld [vmem:[%s321_s0] sm:$0xff]   ;;  %v169_v19 = vshrl.u32 %v168_v18, 7 }
   0x7   :  { %122 = vmatpush1.bf16.msra.mxu0 %v213_v4  ;;  %v162_v21 = vld [vmem:[%s322_s2] sm:$0x3] }
   0x8   :  { %123 = vmatprep.subr.bf16.mxu0 %v214_v5  ;;  %v170_v20 = vsub.s32 0, %v169_v19  ;;  %v174_v22 = vsub.s32 1, %v169_v19 }
   0xa   :  { %v171_v23 = vrot.slane %v162_v21, %v170_v20  ;;  %v175_v25 = vrot.slane %v162_v21, %v174_v22 }
   0xb   :  { %124 = vmatpush1.bf16.msra.mxu0 %v216_v6 }
   0xc   :  { %125 = vmatprep.subr.bf16.mxu0 %v217_v7 }
   0xf   :  { %126 = vmatpush1.bf16.msra.mxu0 %v219_v8 }
  0x10   :  { %127 = vmatprep.subr.bf16.mxu0 %v220_v9 }
  0x13   :  { %128 = vmatpush1.bf16.msra.mxu0 %v222_v10 }
  0x14   :  { %129 = vmatprep.subr.bf16.mxu0 %v223_v11 }
  0x17   :  { %130 = vmatpush1.bf16.msra.mxu0 %v225_v12 }
  0x18   :  { %131 = vmatprep.subr.bf16.mxu0 %v226_v13 }
  0x1b   :  { %132 = vmatpush1.bf16.msra.mxu0 %v228_v14 }
  0x1c   :  { %133 = vmatprep.subr.bf16.mxu0 %v229_v15 }
  0x1f   :  { %134 = vmatpush1.bf16.msra.mxu0 %v231_v16 }
  0x22   :  { %152 = vmatmul.mubr.bf16.vlgmr.msra.gmra.mrb[0].mxu0 %v232_v17 }
  0xf5   :  { %v153_v24 = vpop.f32.mrb[0].mxu0 }
  0xf6   :  { %v163_v26 = vmul.f32 0.33333334, %v153_v24  ;;  %v155_v27 = vpop.f32.mrb[1].mxu0 }
  0xf7   :  { %v164_v28 = vmul.f32 0.33333334, %v155_v27  ;;  %v157_v29 = vpop.f32.mrb[2].mxu0 }
  0xf8   :  { %v178_v30 = vadd.f32 %v171_v23, %v163_v26  ;;  %v165_v31 = vmul.f32 0.33333334, %v157_v29  ;;  %v159_v32 = vpop.f32.mrb[3].mxu0 }
  0xf9   :  { %v179_v33 = vadd.f32 %v175_v25, %v164_v28  ;;  %v166_v34 = vmul.f32 0.33333334, %v159_v32 }
  0xfa   :  { %182 = vst [vmem:[%s323_s3] sm:$0xff] %v178_v30  ;;  %v180_v35 = vadd.f32 %v171_v23, %v165_v31 }
  0xfb   :  { %183 = vst [vmem:[%s323_s3 + $0x8] sm:$0xff] %v179_v33  ;;  %v181_v36 = vadd.f32 %v175_v25, %v166_v34 }
  0xfc   :  { %184 = vst [vmem:[%s323_s3 + $0x10] sm:$0xff] %v180_v35 }
  0xfd   :  { %185 = vst [vmem:[%s323_s3 + $0x18] sm:$0xff] %v181_v36 }

// kernel: my_compgcn_forward.13
= control target key start
LH: loop header
LB: loop body
LE: loop exit
PB: predicated region body
PF: predicated region fallthrough
CT: control target
= control target key end

     0   :  { %v20_v0 = vlaneseq  ;;  %s120_s1 = inlined_call_operand.vmem [shape: f32[1,256], index: 1, kind: input, shape index: {}]   ;;  %s121_s2 = inlined_call_operand.vmem [shape: f32[1,256], index: 2, kind: input, shape index: {}]   ;;  %s122_s0 = inlined_call_operand.vmem [shape: f32[16,256], index: 0, kind: input, shape index: {}]   ;;  %s123_s3 = inlined_call_operand.vmem [shape: f32[16,256], index: 3, kind: output, shape index: {}]  }
   0x1   :  { %v18_v2 = vld [vmem:[%s120_s1] sm:$0x3]  ;;  %v15_v7 = vld [vmem:[%s122_s0 + $0x8] sm:$0xff]  ;;  %v16_v8 = vld [vmem:[%s122_s0 + $0x10] sm:$0xff] }
   0x2   :  { %v21_v1 = vshrl.u32 %v20_v0, 7  ;;  %v34_v3 = vld [vmem:[%s121_s2] sm:$0x3]  ;;  %v17_v9 = vld [vmem:[%s122_s0 + $0x18] sm:$0xff] }
   0x3   :  { %v14_v4 = vld [vmem:[%s122_s0] sm:$0xff] }
   0x4   :  { %v22_v5 = vsub.s32 0, %v21_v1  ;;  %v26_v6 = vsub.s32 1, %v21_v1 }
   0x6   :  { %v23_v10 = vrot.slane %v18_v2, %v22_v5  ;;  %v39_v11 = vrot.slane %v34_v3, %v22_v5  ;;  %v27_v12 = vrot.slane %v18_v2, %v26_v6  ;;  %v43_v13 = vrot.slane %v34_v3, %v26_v6 }
   0x8   :  { %v30_v14 = vmul.f32 %v23_v10, %v14_v4  ;;  %v31_v15 = vmul.f32 %v27_v12, %v15_v7  ;;  %v32_v16 = vmul.f32 %v23_v10, %v16_v8  ;;  %v33_v17 = vmul.f32 %v27_v12, %v17_v9 }
   0xa   :  { %v46_v18 = vadd.f32 %v39_v11, %v30_v14  ;;  %v47_v19 = vadd.f32 %v43_v13, %v31_v15  ;;  %v48_v20 = vadd.f32 %v39_v11, %v32_v16  ;;  %v49_v21 = vadd.f32 %v43_v13, %v33_v17 }
   0xc   :  { %62 = vtanh.f32 %v46_v18 }
   0xd   :  { %64 = vtanh.f32 %v47_v19 }
   0xe   :  { %66 = vtanh.f32 %v48_v20 }
   0xf   :  { %68 = vtanh.f32 %v49_v21 }
  0x16   :  { %v63_v22 = vpop.eup %62 }
  0x17   :  { %v65_v23 = vpop.eup %64  ;;  %54 = vst [vmem:[%s123_s3] sm:$0xff] %v63_v22 }
  0x18   :  { %v67_v24 = vpop.eup %66  ;;  %55 = vst [vmem:[%s123_s3 + $0x8] sm:$0xff] %v65_v23 }
  0x19   :  { %v69_v25 = vpop.eup %68  ;;  %56 = vst [vmem:[%s123_s3 + $0x10] sm:$0xff] %v67_v24 }
  0x1a   :  { %57 = vst [vmem:[%s123_s3 + $0x18] sm:$0xff] %v69_v25 }

// kernel: my_compgcn_forward.14
= control target key start
LH: loop header
LB: loop body
LE: loop exit
PB: predicated region body
PF: predicated region fallthrough
CT: control target
= control target key end

     0   :  { %8 = vsyncpa [#allocation3], 0  ;;  %s250_s12 = smov [#allocation2]   ;;  %s341_s0 = inlined_call_operand.hbm [shape: bf16[8,128], index: 0, kind: input, shape index: {}]   ;;  %s342_s1 = inlined_call_operand.vmem [shape: bf16[128,256], index: 1, kind: input, shape index: {}]   ;;  %s343_s2 = inlined_call_operand.vmem [shape: f32[1,256], index: 2, kind: input, shape index: {}]   ;;  %s344_s3 = inlined_call_operand.vmem [shape: f32[8,256], index: 3, kind: output, shape index: {}]  }
   0x1   :  { %s15_s13 = sshll.u32 %s250_s12, 4  ;;  %s226_s16 = scalar_lea.hbm %s341_s0, 64  ;;  %s16_s13 = int_to_ptr.vmem [resolvable:$true] %s15_s13 }
   0x2   :  { %p227_p0 = scmp.ne.s32.totalorder %s341_s0, %s226_s16  ;;  %p230_p1 = scmp.lt.u32.totalorder %s226_s16, %s341_s0 }
   0x4   :  { %p232_p2 = pnand %p230_p1, %p227_p0 }
   0x6   :  { %235 = shalt.err (!%p232_p2)
}
   0x7   :  { %s236_s21 = scalar_lea.vmem %s16_s13, 64  ;;  %p241_p4 = scmp.lt.s32.totalorder %s16_s13, %s16_s13 }
   0x8   :  { %p237_p3 = scmp.ne.s32.totalorder %s16_s13, %s236_s21  ;;  %p242_p5 = scmp.lt.s32.totalorder %s236_s21, %s236_s21 }
   0xa   :  { %p243_p6 = por %p242_p5, %p241_p4 }
   0xc   :  { %p244_p7 = pnand %p243_p6, %p237_p3 }
   0xe   :  { %247 = shalt.err (!%p244_p7)
}
   0xf   :  { %18 = dma.hbm_to_vmem [thread:$0]  %s341_s0, 64, %s16_s13, [#allocation3]  }
  0x10   :  { %248 = dma.done.wait [#allocation3], 64  }
  0x11   :  { %249 = vsyncadd [#allocation3], 4294967232  ;;  %v251_v0 = vmov 0   ;;  %v202_v1 = vld [vmem:[%s342_s1 + $0x4] ss:$8 sps:$4 sm:$0xff]   ;;  %v46_v18 = vlaneseq }
  0x12   :  { %168 = vmatprep.mubr.bf16.mxu0 %v251_v0  ;;  %v204_v2 = vld [vmem:[%s342_s1] ss:$8 sps:$4 sm:$0xff]   ;;  %136 = vmatprep.subr.bf16.mxu0 %v202_v1  ;;  %v205_v3 = vld [vmem:[%s342_s1 + $0x14] ss:$8 sps:$4 sm:$0xff]   ;;  %v207_v4 = vld [vmem:[%s342_s1 + $0x10] ss:$8 sps:$4 sm:$0xff]  }
  0x13   :  { %137 = vmatpush1.bf16.msra.mxu0 %v204_v2  ;;  %v208_v5 = vld [vmem:[%s342_s1 + $0x24] ss:$8 sps:$4 sm:$0xff]   ;;  %v210_v6 = vld [vmem:[%s342_s1 + $0x20] ss:$8 sps:$4 sm:$0xff]   ;;  %v211_v7 = vld [vmem:[%s342_s1 + $0x34] ss:$8 sps:$4 sm:$0xff]  }
  0x14   :  { %138 = vmatprep.subr.bf16.mxu0 %v205_v3  ;;  %v213_v8 = vld [vmem:[%s342_s1 + $0x30] ss:$8 sps:$4 sm:$0xff]   ;;  %v214_v9 = vld [vmem:[%s342_s1 + $0x44] ss:$8 sps:$4 sm:$0xff]   ;;  %v216_v10 = vld [vmem:[%s342_s1 + $0x40] ss:$8 sps:$4 sm:$0xff]  }
  0x15   :  { %v217_v11 = vld [vmem:[%s342_s1 + $0x54] ss:$8 sps:$4 sm:$0xff]   ;;  %v219_v12 = vld [vmem:[%s342_s1 + $0x50] ss:$8 sps:$4 sm:$0xff]   ;;  %v220_v13 = vld [vmem:[%s342_s1 + $0x64] ss:$8 sps:$4 sm:$0xff]  }
  0x16   :  { %v222_v14 = vld [vmem:[%s342_s1 + $0x60] ss:$8 sps:$4 sm:$0xff]   ;;  %v223_v15 = vld [vmem:[%s342_s1 + $0x74] ss:$8 sps:$4 sm:$0xff]   ;;  %v225_v16 = vld [vmem:[%s342_s1 + $0x70] ss:$8 sps:$4 sm:$0xff]  }
  0x17   :  { %139 = vmatpush1.bf16.msra.mxu0 %v207_v4  ;;  %v27_v17 = vld [vmem:[#allocation2] sm:$0xf]  ;;  %v47_v19 = vshrl.u32 %v46_v18, 7 }
  0x18   :  { %140 = vmatprep.subr.bf16.mxu0 %v208_v5  ;;  %v44_v21 = vld [vmem:[%s343_s2] sm:$0x3] }
  0x19   :  { %v48_v20 = vsub.s32 0, %v47_v19  ;;  %v52_v22 = vsub.s32 1, %v47_v19 }
  0x1b   :  { %141 = vmatpush1.bf16.msra.mxu0 %v210_v6  ;;  %v49_v23 = vrot.slane %v44_v21, %v48_v20  ;;  %v53_v24 = vrot.slane %v44_v21, %v52_v22 }
  0x1c   :  { %142 = vmatprep.subr.bf16.mxu0 %v211_v7 }
  0x1f   :  { %143 = vmatpush1.bf16.msra.mxu0 %v213_v8 }
  0x20   :  { %144 = vmatprep.subr.bf16.mxu0 %v214_v9 }
  0x23   :  { %145 = vmatpush1.bf16.msra.mxu0 %v216_v10 }
  0x24   :  { %146 = vmatprep.subr.bf16.mxu0 %v217_v11 }
  0x27   :  { %147 = vmatpush1.bf16.msra.mxu0 %v219_v12 }
  0x28   :  { %148 = vmatprep.subr.bf16.mxu0 %v220_v13 }
  0x2b   :  { %149 = vmatpush1.bf16.msra.mxu0 %v222_v14 }
  0x2c   :  { %150 = vmatprep.subr.bf16.mxu0 %v223_v15 }
  0x2f   :  { %151 = vmatpush1.bf16.msra.mxu0 %v225_v16 }
  0x32   :  { %169 = vmatmul.mubr.bf16.vlgmr.msra.gmra.mrb[0].mxu0 %v27_v17 }
 0x105   :  { %v170_v25 = vpop.f32.mrb[0].mxu0 }
 0x106   :  { %v171_v26 = vadd.f32 %v170_v25, %v49_v23  ;;  %v172_v27 = vpop.f32.mrb[1].mxu0 }
 0x107   :  { %v173_v28 = vadd.f32 %v172_v27, %v53_v24  ;;  %v174_v29 = vpop.f32.mrb[2].mxu0 }
 0x108   :  { %177 = vst [vmem:[%s344_s3] sm:$0xff] %v171_v26  ;;  %v175_v30 = vpop.f32.mrb[3].mxu0 }
 0x109   :  { %178 = vst [vmem:[%s344_s3 + $0x8] sm:$0xff] %v173_v28 }
 0x10a   :  { %183 = vsyncpa [#allocation3], 1 }

// kernel: my_compgcn_forward.15
= control target key start
LH: loop header
LB: loop body
LE: loop exit
PB: predicated region body
PF: predicated region fallthrough
CT: control target
= control target key end

     0   :  { %s1018_s12 = smov 0   ;;  %s1020_s13 = smov 0   ;;  %s1274_s0 = inlined_call_operand.vmem [shape: bf16[1024,128], index: 0, kind: input, shape index: {}]   ;;  %s1275_s1 = inlined_call_operand.vmem [shape: bf16[128,256], index: 1, kind: input, shape index: {}]   ;;  %s1276_s2 = inlined_call_operand.vmem [shape: f32[1,256], index: 2, kind: input, shape index: {}]   ;;  %s1277_s3 = inlined_call_operand.vmem [shape: f32[1024,256], index: 3, kind: output, shape index: {}]  }
   0x1   :  { %s1022_s14 = smov 0  }
   0x2 LB: > { %s25_s15 = sadd.s32 1, %s991_s13  ;;  %p851_p0 = scmp.ge.s32.totalorder %s995_s14, 1  ;;  %s995_s14 = sphi %s1022_s14, %s13_s14   ;;  %s991_s13 = sphi %s1020_s13, %s1279_s13   ;;  %s987_s12 = sphi %s1018_s12, %s1278_s12  }
   0x3   : > { %p27_p1 = scmp.ge.s32.totalorder %s25_s15, 4  ;;  %p173_p2 = scmp.lt.s32.totalorder %s995_s14, 5 }
   0x5   : > { %s1281_s15 = smov (%p27_p1, %s25_s15), 0  ;;  %p174_p3 = pnand %p851_p0, %p173_p2 }
   0x6   : > { %v933_v0 = vld [vmem:[%s1275_s1 + $0x4] ss:$8 sps:$4 sm:$0xff] (!%p174_p3)   ;;  %s852_s18 = sshll.u32 (!%p174_p3), %s987_s12, 5  ;;  %v935_v1 = vld [vmem:[%s1275_s1] ss:$8 sps:$4 sm:$0xff] (!%p174_p3)   ;;  %v997_v2 = vmov (!%p174_p3), 0   ;;  %v291_v33 = vlaneseq (!%p174_p3) }
   0x7   : > { %177 = sbr.rel (%p174_p3) target bundleno = 314 (0x13a), region = 32  ;;  %509 = vmatprep.mubr.bf16.mxu0 (!%p174_p3), %v997_v2  ;;  %589 = vmatprep.mubr.bf16.mxu1 (!%p174_p3), %v997_v2  ;;  %p212_p4 = scmp.lt.s32.totalorder (!%p174_p3), %s852_s18, 127  ;;  %v936_v3 = vld [vmem:[%s1275_s1 + $0x14] ss:$8 sps:$4 sm:$0xff] (!%p174_p3)   ;;  %v938_v4 = vld [vmem:[%s1275_s1 + $0x10] ss:$8 sps:$4 sm:$0xff] (!%p174_p3)  }
   0x8   : > { %477 = vmatprep.subr.bf16.mxu0 (!%p174_p3), %v933_v0  ;;  %892 = vmatprep.subr.bf16.mxu1 (!%p174_p3), %v933_v0  ;;  %v939_v5 = vld [vmem:[%s1275_s1 + $0x24] ss:$8 sps:$4 sm:$0xff] (!%p174_p3)   ;;  %v941_v6 = vld [vmem:[%s1275_s1 + $0x20] ss:$8 sps:$4 sm:$0xff] (!%p174_p3)   ;;  %v942_v7 = vld [vmem:[%s1275_s1 + $0x34] ss:$8 sps:$4 sm:$0xff] (!%p174_p3)  }
   0x9   : > { %478 = vmatpush1.bf16.msra.mxu0 (!%p174_p3), %v935_v1  ;;  %900 = vmatpush1.bf16.msra.mxu1 (!%p174_p3), %v935_v1  ;;  %v944_v8 = vld [vmem:[%s1275_s1 + $0x30] ss:$8 sps:$4 sm:$0xff] (!%p174_p3)   ;;  %v945_v9 = vld [vmem:[%s1275_s1 + $0x44] ss:$8 sps:$4 sm:$0xff] (!%p174_p3)   ;;  %v947_v10 = vld [vmem:[%s1275_s1 + $0x40] ss:$8 sps:$4 sm:$0xff] (!%p174_p3)  }
   0xa   : > { %479 = vmatprep.subr.bf16.mxu0 (!%p174_p3), %v936_v3  ;;  %893 = vmatprep.subr.bf16.mxu1 (!%p174_p3), %v936_v3  ;;  %v948_v11 = vld [vmem:[%s1275_s1 + $0x54] ss:$8 sps:$4 sm:$0xff] (!%p174_p3)   ;;  %v950_v12 = vld [vmem:[%s1275_s1 + $0x50] ss:$8 sps:$4 sm:$0xff] (!%p174_p3)   ;;  %v951_v13 = vld [vmem:[%s1275_s1 + $0x64] ss:$8 sps:$4 sm:$0xff] (!%p174_p3)  }
   0xb   : > { %v953_v14 = vld [vmem:[%s1275_s1 + $0x60] ss:$8 sps:$4 sm:$0xff] (!%p174_p3)   ;;  %v954_v15 = vld [vmem:[%s1275_s1 + $0x74] ss:$8 sps:$4 sm:$0xff] (!%p174_p3)   ;;  %v956_v16 = vld [vmem:[%s1275_s1 + $0x70] ss:$8 sps:$4 sm:$0xff] (!%p174_p3)  }
   0xc   : > { %v292_v34 = vshrl.u32 (!%p174_p3), %v291_v33, 7  ;;  %v289_v36 = vld [vmem:[%s1276_s2] sm:$0x3] (!%p174_p3) }
   0xd   : > { %480 = vmatpush1.bf16.msra.mxu0 (!%p174_p3), %v938_v4  ;;  %901 = vmatpush1.bf16.msra.mxu1 (!%p174_p3), %v938_v4 }
   0xe   : > { %s1283_s18 = smov (!%p212_p4, %s852_s18), 127  ;;  %481 = vmatprep.subr.bf16.mxu0 %v939_v5  ;;  %894 = vmatprep.subr.bf16.mxu1 %v939_v5  ;;  %v293_v35 = vsub.s32 0, %v292_v34  ;;  %v297_v37 = vsub.s32 1, %v292_v34 }
   0xf   : > { %s853_s27 = sshll.u32 %s1283_s18, 2  ;;  %s891_s5 = sshll.u32 %s1283_s18, 4 }
  0x10   : > { %s1065_s7 = scalar_lea.vmem %s1274_s0, %s853_s27  ;;  %v1128_v38 = vrot.slane %v289_v36, %v293_v35  ;;  %v1130_v39 = vrot.slane %v289_v36, %v297_v37  ;;  %s1135_s9 = scalar_lea.vmem %s1277_s3, %s891_s5 }
  0x11   : > { %482 = vmatpush1.bf16.msra.mxu0 %v941_v6  ;;  %902 = vmatpush1.bf16.msra.mxu1 %v941_v6  ;;  %v957_v17 = vld [vmem:[%s1065_s7] sm:$0xff]   ;;  %v959_v19 = vld [vmem:[%s1065_s7 + $0x8] sm:$0xff]   ;;  %v961_v21 = vld [vmem:[%s1065_s7 + $0x10] sm:$0xff]  }
  0x12   : > { %483 = vmatprep.subr.bf16.mxu0 %v942_v7  ;;  %895 = vmatprep.subr.bf16.mxu1 %v942_v7  ;;  %v958_v18 = vld [vmem:[%s1065_s7 + $0x40] sm:$0xff]   ;;  %v960_v20 = vld [vmem:[%s1065_s7 + $0x48] sm:$0xff]   ;;  %v962_v22 = vld [vmem:[%s1065_s7 + $0x50] sm:$0xff]  }
  0x13   : > { %v963_v23 = vld [vmem:[%s1065_s7 + $0x18] sm:$0xff]   ;;  %v965_v25 = vld [vmem:[%s1065_s7 + $0x20] sm:$0xff]   ;;  %v967_v27 = vld [vmem:[%s1065_s7 + $0x28] sm:$0xff]  }
  0x14   : > { %v964_v24 = vld [vmem:[%s1065_s7 + $0x58] sm:$0xff]   ;;  %v966_v26 = vld [vmem:[%s1065_s7 + $0x60] sm:$0xff]   ;;  %v968_v28 = vld [vmem:[%s1065_s7 + $0x68] sm:$0xff]  }
  0x15   : > { %484 = vmatpush1.bf16.msra.mxu0 %v944_v8  ;;  %903 = vmatpush1.bf16.msra.mxu1 %v944_v8  ;;  %v969_v29 = vld [vmem:[%s1065_s7 + $0x30] sm:$0xff]   ;;  %v971_v31 = vld [vmem:[%s1065_s7 + $0x38] sm:$0xff]  }
  0x16   : > { %485 = vmatprep.subr.bf16.mxu0 %v945_v9  ;;  %896 = vmatprep.subr.bf16.mxu1 %v945_v9  ;;  %v970_v30 = vld [vmem:[%s1065_s7 + $0x70] sm:$0xff]   ;;  %v972_v32 = vld [vmem:[%s1065_s7 + $0x78] sm:$0xff]  }
  0x19   : > { %486 = vmatpush1.bf16.msra.mxu0 %v947_v10  ;;  %904 = vmatpush1.bf16.msra.mxu1 %v947_v10 }
  0x1a   : > { %487 = vmatprep.subr.bf16.mxu0 %v948_v11  ;;  %897 = vmatprep.subr.bf16.mxu1 %v948_v11 }
  0x1d   : > { %488 = vmatpush1.bf16.msra.mxu0 %v950_v12  ;;  %905 = vmatpush1.bf16.msra.mxu1 %v950_v12 }
  0x1e   : > { %489 = vmatprep.subr.bf16.mxu0 %v951_v13  ;;  %898 = vmatprep.subr.bf16.mxu1 %v951_v13 }
  0x21   : > { %490 = vmatpush1.bf16.msra.mxu0 %v953_v14  ;;  %906 = vmatpush1.bf16.msra.mxu1 %v953_v14 }
  0x22   : > { %491 = vmatprep.subr.bf16.mxu0 %v954_v15  ;;  %899 = vmatprep.subr.bf16.mxu1 %v954_v15 }
  0x25   : > { %492 = vmatpush1.bf16.msra.mxu0 %v956_v16  ;;  %907 = vmatpush1.bf16.msra.mxu1 %v956_v16 }
  0x28   : > { %510 = vmatmul.mubr.bf16.vlgmr.msra.gmra.mrb[0].mxu0 %v957_v17  ;;  %590 = vmatmul.mubr.bf16.vlgmr.msra.gmra.mrb[0].mxu1 %v958_v18 }
  0x29   : > { %519 = vmatprep.mubr.bf16.mxu0 %v997_v2  ;;  %599 = vmatprep.mubr.bf16.mxu1 %v997_v2 }
  0x30   : > { %520 = vmatmul.mubr.bf16.gmra.mrb[4].mxu0 %v959_v19  ;;  %600 = vmatmul.mubr.bf16.gmra.mrb[4].mxu1 %v960_v20 }
  0x31   : > { %529 = vmatprep.mubr.bf16.mxu0 %v997_v2  ;;  %609 = vmatprep.mubr.bf16.mxu1 %v997_v2 }
  0x38   : > { %530 = vmatmul.mubr.bf16.gmra.mrb[8].mxu0 %v961_v21  ;;  %610 = vmatmul.mubr.bf16.gmra.mrb[8].mxu1 %v962_v22 }
  0x39   : > { %539 = vmatprep.mubr.bf16.mxu0 %v997_v2  ;;  %619 = vmatprep.mubr.bf16.mxu1 %v997_v2 }
  0x40   : > { %540 = vmatmul.mubr.bf16.gmra.mrb[12].mxu0 %v963_v23  ;;  %620 = vmatmul.mubr.bf16.gmra.mrb[12].mxu1 %v964_v24 }
  0x41   : > { %549 = vmatprep.mubr.bf16.mxu0 %v997_v2  ;;  %629 = vmatprep.mubr.bf16.mxu1 %v997_v2 }
  0x48   : > { %550 = vmatmul.mubr.bf16.gmra.mrb[16].mxu0 %v965_v25  ;;  %630 = vmatmul.mubr.bf16.gmra.mrb[16].mxu1 %v966_v26 }
  0x49   : > { %559 = vmatprep.mubr.bf16.mxu0 %v997_v2  ;;  %639 = vmatprep.mubr.bf16.mxu1 %v997_v2 }
  0x50   : > { %560 = vmatmul.mubr.bf16.gmra.mrb[20].mxu0 %v967_v27  ;;  %640 = vmatmul.mubr.bf16.gmra.mrb[20].mxu1 %v968_v28 }
  0x51   : > { %569 = vmatprep.mubr.bf16.mxu0 %v997_v2  ;;  %649 = vmatprep.mubr.bf16.mxu1 %v997_v2 }
  0x58   : > { %570 = vmatmul.mubr.bf16.gmra.mrb[24].mxu0 %v969_v29  ;;  %650 = vmatmul.mubr.bf16.gmra.mrb[24].mxu1 %v970_v30 }
  0x59   : > { %579 = vmatprep.mubr.bf16.mxu0 %v997_v2  ;;  %659 = vmatprep.mubr.bf16.mxu1 %v997_v2 }
  0x60   : > { %580 = vmatmul.mubr.bf16.gmra.mrb[28].mxu0 %v971_v31  ;;  %660 = vmatmul.mubr.bf16.gmra.mrb[28].mxu1 %v972_v32 }
  0xfb   : > { %v511_v40 = vpop.f32.mrb[0].mxu0  ;;  %v591_v41 = vpop.f32.mrb[0].mxu1 }
  0xfc   : > { %v512_v42 = vadd.f32 %v511_v40, %v1128_v38  ;;  %v592_v43 = vadd.f32 %v591_v41, %v1128_v38  ;;  %v513_v44 = vpop.f32.mrb[1].mxu0  ;;  %v593_v45 = vpop.f32.mrb[1].mxu1 }
  0xfd   : > { %v514_v46 = vadd.f32 %v513_v44, %v1130_v39  ;;  %v594_v47 = vadd.f32 %v593_v45, %v1130_v39  ;;  %v515_v48 = vpop.f32.mrb[2].mxu0  ;;  %v595_v49 = vpop.f32.mrb[2].mxu1 }
  0xfe   : > { %670 = vst [vmem:[%s1135_s9] sm:$0xff] %v512_v42  ;;  %702 = vst [vmem:[%s1135_s9 + $0x100] sm:$0xff] %v592_v43  ;;  %v516_v50 = vadd.f32 %v515_v48, %v1128_v38  ;;  %v596_v51 = vadd.f32 %v595_v49, %v1128_v38  ;;  %v517_v52 = vpop.f32.mrb[3].mxu0  ;;  %v597_v53 = vpop.f32.mrb[3].mxu1 }
  0xff   : > { %671 = vst [vmem:[%s1135_s9 + $0x8] sm:$0xff] %v514_v46  ;;  %703 = vst [vmem:[%s1135_s9 + $0x108] sm:$0xff] %v594_v47  ;;  %v518_v54 = vadd.f32 %v517_v52, %v1130_v39  ;;  %v598_v55 = vadd.f32 %v597_v53, %v1130_v39 }
 0x100   : > { %672 = vst [vmem:[%s1135_s9 + $0x10] sm:$0xff] %v516_v50  ;;  %704 = vst [vmem:[%s1135_s9 + $0x110] sm:$0xff] %v596_v51 }
 0x101   : > { %673 = vst [vmem:[%s1135_s9 + $0x18] sm:$0xff] %v518_v54  ;;  %705 = vst [vmem:[%s1135_s9 + $0x118] sm:$0xff] %v598_v55 }
 0x103   : > { %v521_v56 = vpop.f32.mrb[4].mxu0  ;;  %v601_v57 = vpop.f32.mrb[4].mxu1 }
 0x104   : > { %v522_v58 = vadd.f32 %v521_v56, %v1128_v38  ;;  %v602_v59 = vadd.f32 %v601_v57, %v1128_v38  ;;  %v523_v60 = vpop.f32.mrb[5].mxu0  ;;  %v603_v61 = vpop.f32.mrb[5].mxu1 }
 0x105   : > { %v524_v62 = vadd.f32 %v523_v60, %v1130_v39  ;;  %v604_v63 = vadd.f32 %v603_v61, %v1130_v39  ;;  %v525_v0 = vpop.f32.mrb[6].mxu0  ;;  %v605_v1 = vpop.f32.mrb[6].mxu1 }
 0x106   : > { %674 = vst [vmem:[%s1135_s9 + $0x20] sm:$0xff] %v522_v58  ;;  %706 = vst [vmem:[%s1135_s9 + $0x120] sm:$0xff] %v602_v59  ;;  %v526_v2 = vadd.f32 %v525_v0, %v1128_v38  ;;  %v606_v3 = vadd.f32 %v605_v1, %v1128_v38  ;;  %v527_v4 = vpop.f32.mrb[7].mxu0  ;;  %v607_v5 = vpop.f32.mrb[7].mxu1 }
 0x107   : > { %675 = vst [vmem:[%s1135_s9 + $0x28] sm:$0xff] %v524_v62  ;;  %707 = vst [vmem:[%s1135_s9 + $0x128] sm:$0xff] %v604_v63  ;;  %v528_v6 = vadd.f32 %v527_v4, %v1130_v39  ;;  %v608_v7 = vadd.f32 %v607_v5, %v1130_v39 }
 0x108   : > { %676 = vst [vmem:[%s1135_s9 + $0x30] sm:$0xff] %v526_v2  ;;  %708 = vst [vmem:[%s1135_s9 + $0x130] sm:$0xff] %v606_v3 }
 0x109   : > { %677 = vst [vmem:[%s1135_s9 + $0x38] sm:$0xff] %v528_v6  ;;  %709 = vst [vmem:[%s1135_s9 + $0x138] sm:$0xff] %v608_v7 }
 0x10b   : > { %v531_v8 = vpop.f32.mrb[8].mxu0  ;;  %v611_v9 = vpop.f32.mrb[8].mxu1 }
 0x10c   : > { %v532_v10 = vadd.f32 %v531_v8, %v1128_v38  ;;  %v612_v11 = vadd.f32 %v611_v9, %v1128_v38  ;;  %v533_v12 = vpop.f32.mrb[9].mxu0  ;;  %v613_v13 = vpop.f32.mrb[9].mxu1 }
 0x10d   : > { %v534_v14 = vadd.f32 %v533_v12, %v1130_v39  ;;  %v614_v15 = vadd.f32 %v613_v13, %v1130_v39  ;;  %v535_v16 = vpop.f32.mrb[10].mxu0  ;;  %v615_v17 = vpop.f32.mrb[10].mxu1 }
 0x10e   : > { %678 = vst [vmem:[%s1135_s9 + $0x40] sm:$0xff] %v532_v10  ;;  %710 = vst [vmem:[%s1135_s9 + $0x140] sm:$0xff] %v612_v11  ;;  %v536_v18 = vadd.f32 %v535_v16, %v1128_v38  ;;  %v616_v19 = vadd.f32 %v615_v17, %v1128_v38  ;;  %v537_v20 = vpop.f32.mrb[11].mxu0  ;;  %v617_v21 = vpop.f32.mrb[11].mxu1 }
 0x10f   : > { %679 = vst [vmem:[%s1135_s9 + $0x48] sm:$0xff] %v534_v14  ;;  %711 = vst [vmem:[%s1135_s9 + $0x148] sm:$0xff] %v614_v15  ;;  %v538_v22 = vadd.f32 %v537_v20, %v1130_v39  ;;  %v618_v23 = vadd.f32 %v617_v21, %v1130_v39 }
 0x110   : > { %680 = vst [vmem:[%s1135_s9 + $0x50] sm:$0xff] %v536_v18  ;;  %712 = vst [vmem:[%s1135_s9 + $0x150] sm:$0xff] %v616_v19 }
 0x111   : > { %681 = vst [vmem:[%s1135_s9 + $0x58] sm:$0xff] %v538_v22  ;;  %713 = vst [vmem:[%s1135_s9 + $0x158] sm:$0xff] %v618_v23 }
 0x113   : > { %v541_v24 = vpop.f32.mrb[12].mxu0  ;;  %v621_v25 = vpop.f32.mrb[12].mxu1 }
 0x114   : > { %v542_v26 = vadd.f32 %v541_v24, %v1128_v38  ;;  %v622_v27 = vadd.f32 %v621_v25, %v1128_v38  ;;  %v543_v28 = vpop.f32.mrb[13].mxu0  ;;  %v623_v29 = vpop.f32.mrb[13].mxu1 }
 0x115   : > { %v544_v30 = vadd.f32 %v543_v28, %v1130_v39  ;;  %v624_v31 = vadd.f32 %v623_v29, %v1130_v39  ;;  %v545_v32 = vpop.f32.mrb[14].mxu0  ;;  %v625_v33 = vpop.f32.mrb[14].mxu1 }
 0x116   : > { %682 = vst [vmem:[%s1135_s9 + $0x60] sm:$0xff] %v542_v26  ;;  %714 = vst [vmem:[%s1135_s9 + $0x160] sm:$0xff] %v622_v27  ;;  %v546_v34 = vadd.f32 %v545_v32, %v1128_v38  ;;  %v626_v35 = vadd.f32 %v625_v33, %v1128_v38  ;;  %v547_v36 = vpop.f32.mrb[15].mxu0  ;;  %v627_v37 = vpop.f32.mrb[15].mxu1 }
 0x117   : > { %683 = vst [vmem:[%s1135_s9 + $0x68] sm:$0xff] %v544_v30  ;;  %715 = vst [vmem:[%s1135_s9 + $0x168] sm:$0xff] %v624_v31  ;;  %v548_v40 = vadd.f32 %v547_v36, %v1130_v39  ;;  %v628_v41 = vadd.f32 %v627_v37, %v1130_v39 }
 0x118   : > { %684 = vst [vmem:[%s1135_s9 + $0x70] sm:$0xff] %v546_v34  ;;  %716 = vst [vmem:[%s1135_s9 + $0x170] sm:$0xff] %v626_v35 }
 0x119   : > { %685 = vst [vmem:[%s1135_s9 + $0x78] sm:$0xff] %v548_v40  ;;  %717 = vst [vmem:[%s1135_s9 + $0x178] sm:$0xff] %v628_v41 }
 0x11b   : > { %v551_v42 = vpop.f32.mrb[16].mxu0  ;;  %v631_v43 = vpop.f32.mrb[16].mxu1 }
 0x11c   : > { %v552_v44 = vadd.f32 %v551_v42, %v1128_v38  ;;  %v632_v45 = vadd.f32 %v631_v43, %v1128_v38  ;;  %v553_v46 = vpop.f32.mrb[17].mxu0  ;;  %v633_v47 = vpop.f32.mrb[17].mxu1 }
 0x11d   : > { %v554_v48 = vadd.f32 %v553_v46, %v1130_v39  ;;  %v634_v49 = vadd.f32 %v633_v47, %v1130_v39  ;;  %v555_v50 = vpop.f32.mrb[18].mxu0  ;;  %v635_v51 = vpop.f32.mrb[18].mxu1 }
 0x11e   : > { %686 = vst [vmem:[%s1135_s9 + $0x80] sm:$0xff] %v552_v44  ;;  %718 = vst [vmem:[%s1135_s9 + $0x180] sm:$0xff] %v632_v45  ;;  %v556_v52 = vadd.f32 %v555_v50, %v1128_v38  ;;  %v636_v53 = vadd.f32 %v635_v51, %v1128_v38  ;;  %v557_v54 = vpop.f32.mrb[19].mxu0  ;;  %v637_v55 = vpop.f32.mrb[19].mxu1 }
 0x11f   : > { %687 = vst [vmem:[%s1135_s9 + $0x88] sm:$0xff] %v554_v48  ;;  %719 = vst [vmem:[%s1135_s9 + $0x188] sm:$0xff] %v634_v49  ;;  %v558_v56 = vadd.f32 %v557_v54, %v1130_v39  ;;  %v638_v57 = vadd.f32 %v637_v55, %v1130_v39 }
 0x120   : > { %688 = vst [vmem:[%s1135_s9 + $0x90] sm:$0xff] %v556_v52  ;;  %720 = vst [vmem:[%s1135_s9 + $0x190] sm:$0xff] %v636_v53 }
 0x121   : > { %689 = vst [vmem:[%s1135_s9 + $0x98] sm:$0xff] %v558_v56  ;;  %721 = vst [vmem:[%s1135_s9 + $0x198] sm:$0xff] %v638_v57 }
 0x123   : > { %v561_v58 = vpop.f32.mrb[20].mxu0  ;;  %v641_v59 = vpop.f32.mrb[20].mxu1 }
 0x124   : > { %v562_v60 = vadd.f32 %v561_v58, %v1128_v38  ;;  %v642_v61 = vadd.f32 %v641_v59, %v1128_v38  ;;  %v563_v62 = vpop.f32.mrb[21].mxu0  ;;  %v643_v63 = vpop.f32.mrb[21].mxu1 }
 0x125   : > { %v564_v0 = vadd.f32 %v563_v62, %v1130_v39  ;;  %v644_v1 = vadd.f32 %v643_v63, %v1130_v39  ;;  %v565_v2 = vpop.f32.mrb[22].mxu0  ;;  %v645_v3 = vpop.f32.mrb[22].mxu1 }
 0x126   : > { %690 = vst [vmem:[%s1135_s9 + $0xa0] sm:$0xff] %v562_v60  ;;  %722 = vst [vmem:[%s1135_s9 + $0x1a0] sm:$0xff] %v642_v61  ;;  %v566_v4 = vadd.f32 %v565_v2, %v1128_v38  ;;  %v646_v5 = vadd.f32 %v645_v3, %v1128_v38  ;;  %v567_v6 = vpop.f32.mrb[23].mxu0  ;;  %v647_v7 = vpop.f32.mrb[23].mxu1 }
 0x127   : > { %691 = vst [vmem:[%s1135_s9 + $0xa8] sm:$0xff] %v564_v0  ;;  %723 = vst [vmem:[%s1135_s9 + $0x1a8] sm:$0xff] %v644_v1  ;;  %v568_v8 = vadd.f32 %v567_v6, %v1130_v39  ;;  %v648_v9 = vadd.f32 %v647_v7, %v1130_v39 }
 0x128   : > { %692 = vst [vmem:[%s1135_s9 + $0xb0] sm:$0xff] %v566_v4  ;;  %724 = vst [vmem:[%s1135_s9 + $0x1b0] sm:$0xff] %v646_v5 }
 0x129   : > { %693 = vst [vmem:[%s1135_s9 + $0xb8] sm:$0xff] %v568_v8  ;;  %725 = vst [vmem:[%s1135_s9 + $0x1b8] sm:$0xff] %v648_v9 }
 0x12b   : > { %v571_v10 = vpop.f32.mrb[24].mxu0  ;;  %v651_v11 = vpop.f32.mrb[24].mxu1 }
 0x12c   : > { %v572_v12 = vadd.f32 %v571_v10, %v1128_v38  ;;  %v652_v13 = vadd.f32 %v651_v11, %v1128_v38  ;;  %v573_v14 = vpop.f32.mrb[25].mxu0  ;;  %v653_v15 = vpop.f32.mrb[25].mxu1 }
 0x12d   : > { %v574_v16 = vadd.f32 %v573_v14, %v1130_v39  ;;  %v654_v17 = vadd.f32 %v653_v15, %v1130_v39  ;;  %v575_v18 = vpop.f32.mrb[26].mxu0  ;;  %v655_v19 = vpop.f32.mrb[26].mxu1 }
 0x12e   : > { %694 = vst [vmem:[%s1135_s9 + $0xc0] sm:$0xff] %v572_v12  ;;  %726 = vst [vmem:[%s1135_s9 + $0x1c0] sm:$0xff] %v652_v13  ;;  %v576_v20 = vadd.f32 %v575_v18, %v1128_v38  ;;  %v656_v21 = vadd.f32 %v655_v19, %v1128_v38  ;;  %v577_v22 = vpop.f32.mrb[27].mxu0  ;;  %v657_v23 = vpop.f32.mrb[27].mxu1 }
 0x12f   : > { %695 = vst [vmem:[%s1135_s9 + $0xc8] sm:$0xff] %v574_v16  ;;  %727 = vst [vmem:[%s1135_s9 + $0x1c8] sm:$0xff] %v654_v17  ;;  %v578_v24 = vadd.f32 %v577_v22, %v1130_v39  ;;  %v658_v25 = vadd.f32 %v657_v23, %v1130_v39 }
 0x130   : > { %696 = vst [vmem:[%s1135_s9 + $0xd0] sm:$0xff] %v576_v20  ;;  %728 = vst [vmem:[%s1135_s9 + $0x1d0] sm:$0xff] %v656_v21 }
 0x131   : > { %697 = vst [vmem:[%s1135_s9 + $0xd8] sm:$0xff] %v578_v24  ;;  %729 = vst [vmem:[%s1135_s9 + $0x1d8] sm:$0xff] %v658_v25 }
 0x133   : > { %v581_v26 = vpop.f32.mrb[28].mxu0  ;;  %v661_v27 = vpop.f32.mrb[28].mxu1 }
 0x134   : > { %v582_v28 = vadd.f32 %v581_v26, %v1128_v38  ;;  %v662_v29 = vadd.f32 %v661_v27, %v1128_v38  ;;  %v583_v30 = vpop.f32.mrb[29].mxu0  ;;  %v663_v31 = vpop.f32.mrb[29].mxu1 }
 0x135   : > { %v584_v32 = vadd.f32 %v583_v30, %v1130_v39  ;;  %v664_v33 = vadd.f32 %v663_v31, %v1130_v39  ;;  %v585_v34 = vpop.f32.mrb[30].mxu0  ;;  %v665_v35 = vpop.f32.mrb[30].mxu1 }
 0x136   : > { %698 = vst [vmem:[%s1135_s9 + $0xe0] sm:$0xff] %v582_v28  ;;  %730 = vst [vmem:[%s1135_s9 + $0x1e0] sm:$0xff] %v662_v29  ;;  %v586_v36 = vadd.f32 %v585_v34, %v1128_v38  ;;  %v666_v37 = vadd.f32 %v665_v35, %v1128_v38  ;;  %v587_v40 = vpop.f32.mrb[31].mxu0  ;;  %v667_v41 = vpop.f32.mrb[31].mxu1 }
 0x137   : > { %699 = vst [vmem:[%s1135_s9 + $0xe8] sm:$0xff] %v584_v32  ;;  %731 = vst [vmem:[%s1135_s9 + $0x1e8] sm:$0xff] %v664_v33  ;;  %v588_v42 = vadd.f32 %v587_v40, %v1130_v39  ;;  %v668_v43 = vadd.f32 %v667_v41, %v1130_v39 }
 0x138   : > { %700 = vst [vmem:[%s1135_s9 + $0xf0] sm:$0xff] %v586_v36  ;;  %732 = vst [vmem:[%s1135_s9 + $0x1f0] sm:$0xff] %v666_v37 }
 0x139   : > { %701 = vst [vmem:[%s1135_s9 + $0xf8] sm:$0xff] %v588_v42  ;;  %733 = vst [vmem:[%s1135_s9 + $0x1f8] sm:$0xff] %v668_v43 }
 0x13a PF: > { %s13_s14 = sadd.s32 1, %s995_s14   ;;  %s1278_s12 = smov %s991_s13 }
 0x13b   : > { %p10_p5 = scmp.ge.s32.totalorder %s13_s14, 6   ;;  %s1279_s13 = smov %s1281_s15 }
 0x13d   :  { %12 = sbr.rel (!%p10_p5) target bundleno = 2 (0x2), region = 68 }

// kernel: my_compgcn_forward.16
= control target key start
LH: loop header
LB: loop body
LE: loop exit
PB: predicated region body
PF: predicated region fallthrough
CT: control target
= control target key end

     0   :  { %s952_s12 = smov 0   ;;  %s1502_s0 = inlined_call_operand.vmem [shape: f32[1024,256], index: 0, kind: input, shape index: {}]   ;;  %s1503_s1 = inlined_call_operand.vmem [shape: f32[1,256], index: 1, kind: input, shape index: {}]   ;;  %s1504_s2 = inlined_call_operand.vmem [shape: f32[1,256], index: 2, kind: input, shape index: {}]   ;;  %s1505_s3 = inlined_call_operand.vmem [shape: f32[1024,256], index: 3, kind: output, shape index: {}]  }
   0x1 LB: > { %s901_s13 = sadd.s32 4294967295, %s930_s12   ;;  %p905_p0 = scmp.ge.s32.totalorder %s930_s12, 1  ;;  %s930_s12 = sphi %s952_s12, %s13_s12  }
   0x2   : > { %p139_p1 = scmp.lt.s32.totalorder %s930_s12, 3 }
   0x4   : > { %p140_p2 = pnand %p905_p0, %p139_p1 }
   0x5   : > { %s906_s14 = sshll.u32 (!%p140_p2), %s901_s13, 6  ;;  %v309_v0 = vlaneseq (!%p140_p2)  ;;  %v307_v2 = vld [vmem:[%s1503_s1] sm:$0x3] (!%p140_p2) }
   0x6   : > { %143 = sbr.rel (%p140_p2) target bundleno = 118 (0x76), region = 32  ;;  %p166_p3 = scmp.lt.s32.totalorder (!%p140_p2), %s906_s14, 127  ;;  %v447_v3 = vld [vmem:[%s1504_s2] sm:$0x3] (!%p140_p2) }
   0x7   : > { %v310_v1 = vshrl.u32 (!%p140_p2), %v309_v0, 7 }
   0x9   : > { %v311_v4 = vsub.s32 (!%p140_p2), 0, %v310_v1  ;;  %v315_v5 = vsub.s32 (!%p140_p2), 1, %v310_v1 }
   0xb   : > { %v974_v6 = vrot.slane (!%p140_p2), %v307_v2, %v311_v4  ;;  %v976_v7 = vrot.slane (!%p140_p2), %v447_v3, %v311_v4  ;;  %v978_v8 = vrot.slane (!%p140_p2), %v307_v2, %v315_v5  ;;  %v980_v9 = vrot.slane (!%p140_p2), %v447_v3, %v315_v5 }
   0xd   : > { %s1507_s14 = smov (!%p166_p3, %s906_s14), 127 }
   0xe   : > { %s914_s19 = sshll.u32 %s1507_s14, 4 }
   0xf   : > { %s972_s22 = scalar_lea.vmem %s1502_s0, %s914_s19  ;;  %s1003_s25 = scalar_lea.vmem %s1505_s3, %s914_s19 }
  0x10   : > { %v179_v10 = vld [vmem:[%s972_s22] sm:$0xff]  ;;  %v180_v11 = vld [vmem:[%s972_s22 + $0x8] sm:$0xff]  ;;  %v181_v12 = vld [vmem:[%s972_s22 + $0x10] sm:$0xff] }
  0x11   : > { %v319_v13 = vmul.f32 %v974_v6, %v179_v10  ;;  %v320_v14 = vmul.f32 %v978_v8, %v180_v11  ;;  %v321_v15 = vmul.f32 %v974_v6, %v181_v12  ;;  %v182_v16 = vld [vmem:[%s972_s22 + $0x18] sm:$0xff]  ;;  %v183_v17 = vld [vmem:[%s972_s22 + $0x20] sm:$0xff]  ;;  %v184_v18 = vld [vmem:[%s972_s22 + $0x28] sm:$0xff] }
  0x12   : > { %v322_v19 = vmul.f32 %v978_v8, %v182_v16  ;;  %v323_v20 = vmul.f32 %v974_v6, %v183_v17  ;;  %v324_v21 = vmul.f32 %v978_v8, %v184_v18  ;;  %v185_v22 = vld [vmem:[%s972_s22 + $0x30] sm:$0xff]  ;;  %v186_v23 = vld [vmem:[%s972_s22 + $0x38] sm:$0xff]  ;;  %v187_v32 = vld [vmem:[%s972_s22 + $0x40] sm:$0xff] }
  0x13   : > { %v459_v24 = vadd.f32 %v976_v7, %v319_v13  ;;  %v460_v25 = vadd.f32 %v980_v9, %v320_v14  ;;  %v461_v26 = vadd.f32 %v976_v7, %v321_v15  ;;  %v325_v27 = vmul.f32 %v974_v6, %v185_v22  ;;  %v188_v33 = vld [vmem:[%s972_s22 + $0x48] sm:$0xff]  ;;  %v189_v34 = vld [vmem:[%s972_s22 + $0x50] sm:$0xff]  ;;  %v190_v39 = vld [vmem:[%s972_s22 + $0x58] sm:$0xff] }
  0x14   : > { %v462_v28 = vadd.f32 %v980_v9, %v322_v19  ;;  %v463_v29 = vadd.f32 %v976_v7, %v323_v20  ;;  %v464_v30 = vadd.f32 %v980_v9, %v324_v21  ;;  %v326_v31 = vmul.f32 %v978_v8, %v186_v23  ;;  %v191_v40 = vld [vmem:[%s972_s22 + $0x60] sm:$0xff]  ;;  %v192_v41 = vld [vmem:[%s972_s22 + $0x68] sm:$0xff]  ;;  %v193_v46 = vld [vmem:[%s972_s22 + $0x70] sm:$0xff] }
  0x15   : > { %v587_v35 = vmax.f32 %v459_v24, 0.0  ;;  %v588_v36 = vmax.f32 %v460_v25, 0.0  ;;  %v589_v37 = vmax.f32 %v461_v26, 0.0  ;;  %v465_v38 = vadd.f32 %v976_v7, %v325_v27  ;;  %v194_v51 = vld [vmem:[%s972_s22 + $0x78] sm:$0xff]  ;;  %v195_v0 = vld [vmem:[%s972_s22 + $0x80] sm:$0xff]  ;;  %v196_v1 = vld [vmem:[%s972_s22 + $0x88] sm:$0xff] }
  0x16   : > { %v590_v42 = vmax.f32 %v462_v28, 0.0  ;;  %v591_v43 = vmax.f32 %v463_v29, 0.0  ;;  %v592_v44 = vmax.f32 %v464_v30, 0.0  ;;  %v466_v45 = vadd.f32 %v980_v9, %v326_v31  ;;  %v197_v2 = vld [vmem:[%s972_s22 + $0x90] sm:$0xff]  ;;  %v198_v11 = vld [vmem:[%s972_s22 + $0x98] sm:$0xff]  ;;  %v199_v12 = vld [vmem:[%s972_s22 + $0xa0] sm:$0xff] }
  0x17   : > { %715 = vst [vmem:[%s1003_s25] sm:$0xff] %v587_v35  ;;  %716 = vst [vmem:[%s1003_s25 + $0x8] sm:$0xff] %v588_v36  ;;  %v593_v47 = vmax.f32 %v465_v38, 0.0  ;;  %v327_v48 = vmul.f32 %v974_v6, %v187_v32  ;;  %v328_v49 = vmul.f32 %v978_v8, %v188_v33  ;;  %v329_v50 = vmul.f32 %v974_v6, %v189_v34  ;;  %v200_v13 = vld [vmem:[%s972_s22 + $0xa8] sm:$0xff]  ;;  %v201_v18 = vld [vmem:[%s972_s22 + $0xb0] sm:$0xff] }
  0x18   : > { %717 = vst [vmem:[%s1003_s25 + $0x10] sm:$0xff] %v589_v37  ;;  %718 = vst [vmem:[%s1003_s25 + $0x18] sm:$0xff] %v590_v42  ;;  %v594_v52 = vmax.f32 %v466_v45, 0.0  ;;  %v330_v53 = vmul.f32 %v978_v8, %v190_v39  ;;  %v331_v54 = vmul.f32 %v974_v6, %v191_v40  ;;  %v332_v55 = vmul.f32 %v978_v8, %v192_v41  ;;  %v202_v23 = vld [vmem:[%s972_s22 + $0xb8] sm:$0xff]  ;;  %v203_v36 = vld [vmem:[%s972_s22 + $0xc0] sm:$0xff] }
  0x19   : > { %719 = vst [vmem:[%s1003_s25 + $0x20] sm:$0xff] %v591_v43  ;;  %720 = vst [vmem:[%s1003_s25 + $0x28] sm:$0xff] %v592_v44  ;;  %v467_v56 = vadd.f32 %v976_v7, %v327_v48  ;;  %v468_v57 = vadd.f32 %v980_v9, %v328_v49  ;;  %v469_v58 = vadd.f32 %v976_v7, %v329_v50  ;;  %v204_v37 = vld [vmem:[%s972_s22 + $0xc8] sm:$0xff]  ;;  %v205_v38 = vld [vmem:[%s972_s22 + $0xd0] sm:$0xff] }
  0x1a   : > { %721 = vst [vmem:[%s1003_s25 + $0x30] sm:$0xff] %v593_v47  ;;  %v333_v59 = vmul.f32 %v974_v6, %v193_v46  ;;  %722 = vst [vmem:[%s1003_s25 + $0x38] sm:$0xff] %v594_v52  ;;  %v470_v60 = vadd.f32 %v980_v9, %v330_v53  ;;  %v471_v61 = vadd.f32 %v976_v7, %v331_v54  ;;  %v206_v43 = vld [vmem:[%s972_s22 + $0xd8] sm:$0xff]  ;;  %v207_v44 = vld [vmem:[%s972_s22 + $0xe0] sm:$0xff] }
  0x1b   : > { %v472_v62 = vadd.f32 %v980_v9, %v332_v55  ;;  %v334_v63 = vmul.f32 %v978_v8, %v194_v51  ;;  %v595_v3 = vmax.f32 %v467_v56, 0.0  ;;  %v596_v4 = vmax.f32 %v468_v57, 0.0  ;;  %v208_v45 = vld [vmem:[%s972_s22 + $0xe8] sm:$0xff]  ;;  %v209_v50 = vld [vmem:[%s972_s22 + $0xf0] sm:$0xff]  ;;  %v210_v55 = vld [vmem:[%s972_s22 + $0xf8] sm:$0xff] }
  0x1c   : > { %v597_v5 = vmax.f32 %v469_v58, 0.0  ;;  %v473_v10 = vadd.f32 %v976_v7, %v333_v59  ;;  %v598_v14 = vmax.f32 %v470_v60, 0.0  ;;  %v599_v15 = vmax.f32 %v471_v61, 0.0 }
  0x1d   : > { %v600_v16 = vmax.f32 %v472_v62, 0.0  ;;  %v474_v17 = vadd.f32 %v980_v9, %v334_v63  ;;  %723 = vst [vmem:[%s1003_s25 + $0x40] sm:$0xff] %v595_v3  ;;  %724 = vst [vmem:[%s1003_s25 + $0x48] sm:$0xff] %v596_v4  ;;  %v335_v20 = vmul.f32 %v974_v6, %v195_v0  ;;  %v336_v21 = vmul.f32 %v978_v8, %v196_v1  ;;  %v211_v4 = vld [vmem:[%s972_s22 + $0x100] sm:$0xff] }
  0x1e   : > { %725 = vst [vmem:[%s1003_s25 + $0x50] sm:$0xff] %v597_v5  ;;  %v601_v19 = vmax.f32 %v473_v10, 0.0  ;;  %v337_v22 = vmul.f32 %v974_v6, %v197_v2  ;;  %726 = vst [vmem:[%s1003_s25 + $0x58] sm:$0xff] %v598_v14  ;;  %v338_v25 = vmul.f32 %v978_v8, %v198_v11  ;;  %v339_v26 = vmul.f32 %v974_v6, %v199_v12  ;;  %v212_v5 = vld [vmem:[%s972_s22 + $0x108] sm:$0xff]  ;;  %v213_v10 = vld [vmem:[%s972_s22 + $0x110] sm:$0xff] }
  0x1f   : > { %727 = vst [vmem:[%s1003_s25 + $0x60] sm:$0xff] %v599_v15  ;;  %728 = vst [vmem:[%s1003_s25 + $0x68] sm:$0xff] %v600_v16  ;;  %v602_v24 = vmax.f32 %v474_v17, 0.0  ;;  %v340_v27 = vmul.f32 %v978_v8, %v200_v13  ;;  %v475_v28 = vadd.f32 %v976_v7, %v335_v20  ;;  %v476_v29 = vadd.f32 %v980_v9, %v336_v21  ;;  %v214_v15 = vld [vmem:[%s972_s22 + $0x118] sm:$0xff]  ;;  %v215_v16 = vld [vmem:[%s972_s22 + $0x120] sm:$0xff] }
  0x20   : > { %729 = vst [vmem:[%s1003_s25 + $0x70] sm:$0xff] %v601_v19  ;;  %v477_v30 = vadd.f32 %v976_v7, %v337_v22  ;;  %v341_v31 = vmul.f32 %v974_v6, %v201_v18  ;;  %v478_v32 = vadd.f32 %v980_v9, %v338_v25  ;;  %v479_v33 = vadd.f32 %v976_v7, %v339_v26  ;;  %v216_v17 = vld [vmem:[%s972_s22 + $0x128] sm:$0xff]  ;;  %v217_v22 = vld [vmem:[%s972_s22 + $0x130] sm:$0xff] }
  0x21   : > { %730 = vst [vmem:[%s1003_s25 + $0x78] sm:$0xff] %v602_v24  ;;  %v480_v34 = vadd.f32 %v980_v9, %v340_v27  ;;  %v342_v35 = vmul.f32 %v978_v8, %v202_v23  ;;  %v603_v39 = vmax.f32 %v475_v28, 0.0  ;;  %v604_v40 = vmax.f32 %v476_v29, 0.0  ;;  %v218_v27 = vld [vmem:[%s972_s22 + $0x138] sm:$0xff] }
  0x22   : > { %v605_v41 = vmax.f32 %v477_v30, 0.0  ;;  %v481_v42 = vadd.f32 %v976_v7, %v341_v31  ;;  %v606_v46 = vmax.f32 %v478_v32, 0.0  ;;  %v607_v47 = vmax.f32 %v479_v33, 0.0 }
  0x23   : > { %v608_v48 = vmax.f32 %v480_v34, 0.0  ;;  %v482_v49 = vadd.f32 %v980_v9, %v342_v35  ;;  %731 = vst [vmem:[%s1003_s25 + $0x80] sm:$0xff] %v603_v39  ;;  %732 = vst [vmem:[%s1003_s25 + $0x88] sm:$0xff] %v604_v40  ;;  %v343_v52 = vmul.f32 %v974_v6, %v203_v36  ;;  %v344_v53 = vmul.f32 %v978_v8, %v204_v37  ;;  %v219_v40 = vld [vmem:[%s972_s22 + $0x140] sm:$0xff] }
  0x24   : > { %733 = vst [vmem:[%s1003_s25 + $0x90] sm:$0xff] %v605_v41  ;;  %v609_v51 = vmax.f32 %v481_v42, 0.0  ;;  %v345_v54 = vmul.f32 %v974_v6, %v205_v38  ;;  %734 = vst [vmem:[%s1003_s25 + $0x98] sm:$0xff] %v606_v46  ;;  %v346_v57 = vmul.f32 %v978_v8, %v206_v43  ;;  %v347_v58 = vmul.f32 %v974_v6, %v207_v44  ;;  %v220_v41 = vld [vmem:[%s972_s22 + $0x148] sm:$0xff]  ;;  %v221_v42 = vld [vmem:[%s972_s22 + $0x150] sm:$0xff] }
  0x25   : > { %735 = vst [vmem:[%s1003_s25 + $0xa0] sm:$0xff] %v607_v47  ;;  %736 = vst [vmem:[%s1003_s25 + $0xa8] sm:$0xff] %v608_v48  ;;  %v610_v56 = vmax.f32 %v482_v49, 0.0  ;;  %v348_v59 = vmul.f32 %v978_v8, %v208_v45  ;;  %v483_v60 = vadd.f32 %v976_v7, %v343_v52  ;;  %v484_v61 = vadd.f32 %v980_v9, %v344_v53  ;;  %v222_v47 = vld [vmem:[%s972_s22 + $0x158] sm:$0xff]  ;;  %v223_v48 = vld [vmem:[%s972_s22 + $0x160] sm:$0xff] }
  0x26   : > { %737 = vst [vmem:[%s1003_s25 + $0xb0] sm:$0xff] %v609_v51  ;;  %v485_v62 = vadd.f32 %v976_v7, %v345_v54  ;;  %v349_v63 = vmul.f32 %v974_v6, %v209_v50  ;;  %v486_v0 = vadd.f32 %v980_v9, %v346_v57  ;;  %v487_v1 = vadd.f32 %v976_v7, %v347_v58  ;;  %v224_v49 = vld [vmem:[%s972_s22 + $0x168] sm:$0xff]  ;;  %v225_v54 = vld [vmem:[%s972_s22 + $0x170] sm:$0xff] }
  0x27   : > { %738 = vst [vmem:[%s1003_s25 + $0xb8] sm:$0xff] %v610_v56  ;;  %v488_v2 = vadd.f32 %v980_v9, %v348_v59  ;;  %v350_v3 = vmul.f32 %v978_v8, %v210_v55  ;;  %v611_v11 = vmax.f32 %v483_v60, 0.0  ;;  %v612_v12 = vmax.f32 %v484_v61, 0.0  ;;  %v226_v59 = vld [vmem:[%s972_s22 + $0x178] sm:$0xff] }
  0x28   : > { %v613_v13 = vmax.f32 %v485_v62, 0.0  ;;  %v489_v14 = vadd.f32 %v976_v7, %v349_v63  ;;  %v614_v18 = vmax.f32 %v486_v0, 0.0  ;;  %v615_v19 = vmax.f32 %v487_v1, 0.0 }
  0x29   : > { %v616_v20 = vmax.f32 %v488_v2, 0.0  ;;  %v490_v21 = vadd.f32 %v980_v9, %v350_v3  ;;  %739 = vst [vmem:[%s1003_s25 + $0xc0] sm:$0xff] %v611_v11  ;;  %740 = vst [vmem:[%s1003_s25 + $0xc8] sm:$0xff] %v612_v12  ;;  %v351_v24 = vmul.f32 %v974_v6, %v211_v4  ;;  %v352_v25 = vmul.f32 %v978_v8, %v212_v5  ;;  %v227_v12 = vld [vmem:[%s972_s22 + $0x180] sm:$0xff] }
  0x2a   : > { %741 = vst [vmem:[%s1003_s25 + $0xd0] sm:$0xff] %v613_v13  ;;  %v617_v23 = vmax.f32 %v489_v14, 0.0  ;;  %v353_v26 = vmul.f32 %v974_v6, %v213_v10  ;;  %742 = vst [vmem:[%s1003_s25 + $0xd8] sm:$0xff] %v614_v18  ;;  %v354_v29 = vmul.f32 %v978_v8, %v214_v15  ;;  %v355_v30 = vmul.f32 %v974_v6, %v215_v16  ;;  %v228_v13 = vld [vmem:[%s972_s22 + $0x188] sm:$0xff]  ;;  %v229_v14 = vld [vmem:[%s972_s22 + $0x190] sm:$0xff] }
  0x2b   : > { %743 = vst [vmem:[%s1003_s25 + $0xe0] sm:$0xff] %v615_v19  ;;  %744 = vst [vmem:[%s1003_s25 + $0xe8] sm:$0xff] %v616_v20  ;;  %v618_v28 = vmax.f32 %v490_v21, 0.0  ;;  %v356_v31 = vmul.f32 %v978_v8, %v216_v17  ;;  %v491_v32 = vadd.f32 %v976_v7, %v351_v24  ;;  %v492_v33 = vadd.f32 %v980_v9, %v352_v25  ;;  %v230_v19 = vld [vmem:[%s972_s22 + $0x198] sm:$0xff]  ;;  %v231_v20 = vld [vmem:[%s972_s22 + $0x1a0] sm:$0xff] }
  0x2c   : > { %745 = vst [vmem:[%s1003_s25 + $0xf0] sm:$0xff] %v617_v23  ;;  %v493_v34 = vadd.f32 %v976_v7, %v353_v26  ;;  %v357_v35 = vmul.f32 %v974_v6, %v217_v22  ;;  %v494_v36 = vadd.f32 %v980_v9, %v354_v29  ;;  %v495_v37 = vadd.f32 %v976_v7, %v355_v30  ;;  %v232_v21 = vld [vmem:[%s972_s22 + $0x1a8] sm:$0xff]  ;;  %v233_v26 = vld [vmem:[%s972_s22 + $0x1b0] sm:$0xff] }
  0x2d   : > { %746 = vst [vmem:[%s1003_s25 + $0xf8] sm:$0xff] %v618_v28  ;;  %v496_v38 = vadd.f32 %v980_v9, %v356_v31  ;;  %v358_v39 = vmul.f32 %v978_v8, %v218_v27  ;;  %v619_v43 = vmax.f32 %v491_v32, 0.0  ;;  %v620_v44 = vmax.f32 %v492_v33, 0.0  ;;  %v234_v31 = vld [vmem:[%s972_s22 + $0x1b8] sm:$0xff] }
  0x2e   : > { %v621_v45 = vmax.f32 %v493_v34, 0.0  ;;  %v497_v46 = vadd.f32 %v976_v7, %v357_v35  ;;  %v622_v50 = vmax.f32 %v494_v36, 0.0  ;;  %v623_v51 = vmax.f32 %v495_v37, 0.0 }
  0x2f   : > { %v624_v52 = vmax.f32 %v496_v38, 0.0  ;;  %v498_v53 = vadd.f32 %v980_v9, %v358_v39  ;;  %747 = vst [vmem:[%s1003_s25 + $0x100] sm:$0xff] %v619_v43  ;;  %748 = vst [vmem:[%s1003_s25 + $0x108] sm:$0xff] %v620_v44  ;;  %v359_v56 = vmul.f32 %v974_v6, %v219_v40  ;;  %v360_v57 = vmul.f32 %v978_v8, %v220_v41  ;;  %v235_v44 = vld [vmem:[%s972_s22 + $0x1c0] sm:$0xff] }
  0x30   : > { %749 = vst [vmem:[%s1003_s25 + $0x110] sm:$0xff] %v621_v45  ;;  %v625_v55 = vmax.f32 %v497_v46, 0.0  ;;  %v361_v58 = vmul.f32 %v974_v6, %v221_v42  ;;  %750 = vst [vmem:[%s1003_s25 + $0x118] sm:$0xff] %v622_v50  ;;  %v362_v61 = vmul.f32 %v978_v8, %v222_v47  ;;  %v363_v62 = vmul.f32 %v974_v6, %v223_v48  ;;  %v236_v45 = vld [vmem:[%s972_s22 + $0x1c8] sm:$0xff]  ;;  %v237_v46 = vld [vmem:[%s972_s22 + $0x1d0] sm:$0xff] }
  0x31   : > { %751 = vst [vmem:[%s1003_s25 + $0x120] sm:$0xff] %v623_v51  ;;  %752 = vst [vmem:[%s1003_s25 + $0x128] sm:$0xff] %v624_v52  ;;  %v626_v60 = vmax.f32 %v498_v53, 0.0  ;;  %v364_v63 = vmul.f32 %v978_v8, %v224_v49  ;;  %v499_v0 = vadd.f32 %v976_v7, %v359_v56  ;;  %v500_v1 = vadd.f32 %v980_v9, %v360_v57  ;;  %v238_v51 = vld [vmem:[%s972_s22 + $0x1d8] sm:$0xff]  ;;  %v239_v52 = vld [vmem:[%s972_s22 + $0x1e0] sm:$0xff] }
  0x32   : > { %753 = vst [vmem:[%s1003_s25 + $0x130] sm:$0xff] %v625_v55  ;;  %v501_v2 = vadd.f32 %v976_v7, %v361_v58  ;;  %v365_v3 = vmul.f32 %v974_v6, %v225_v54  ;;  %v502_v4 = vadd.f32 %v980_v9, %v362_v61  ;;  %v503_v5 = vadd.f32 %v976_v7, %v363_v62  ;;  %v240_v53 = vld [vmem:[%s972_s22 + $0x1e8] sm:$0xff]  ;;  %v241_v58 = vld [vmem:[%s972_s22 + $0x1f0] sm:$0xff] }
  0x33   : > { %754 = vst [vmem:[%s1003_s25 + $0x138] sm:$0xff] %v626_v60  ;;  %v504_v10 = vadd.f32 %v980_v9, %v364_v63  ;;  %v366_v11 = vmul.f32 %v978_v8, %v226_v59  ;;  %v627_v15 = vmax.f32 %v499_v0, 0.0  ;;  %v628_v16 = vmax.f32 %v500_v1, 0.0  ;;  %v242_v63 = vld [vmem:[%s972_s22 + $0x1f8] sm:$0xff] }
  0x34   : > { %v629_v17 = vmax.f32 %v501_v2, 0.0  ;;  %v505_v18 = vadd.f32 %v976_v7, %v365_v3  ;;  %v630_v22 = vmax.f32 %v502_v4, 0.0  ;;  %v631_v23 = vmax.f32 %v503_v5, 0.0 }
  0x35   : > { %v632_v24 = vmax.f32 %v504_v10, 0.0  ;;  %v506_v25 = vadd.f32 %v980_v9, %v366_v11  ;;  %755 = vst [vmem:[%s1003_s25 + $0x140] sm:$0xff] %v627_v15  ;;  %756 = vst [vmem:[%s1003_s25 + $0x148] sm:$0xff] %v628_v16  ;;  %v367_v28 = vmul.f32 %v974_v6, %v227_v12  ;;  %v368_v29 = vmul.f32 %v978_v8, %v228_v13  ;;  %v243_v16 = vld [vmem:[%s972_s22 + $0x200] sm:$0xff] }
  0x36   : > { %757 = vst [vmem:[%s1003_s25 + $0x150] sm:$0xff] %v629_v17  ;;  %v633_v27 = vmax.f32 %v505_v18, 0.0  ;;  %v369_v30 = vmul.f32 %v974_v6, %v229_v14  ;;  %758 = vst [vmem:[%s1003_s25 + $0x158] sm:$0xff] %v630_v22  ;;  %v370_v33 = vmul.f32 %v978_v8, %v230_v19  ;;  %v371_v34 = vmul.f32 %v974_v6, %v231_v20  ;;  %v244_v17 = vld [vmem:[%s972_s22 + $0x208] sm:$0xff]  ;;  %v245_v18 = vld [vmem:[%s972_s22 + $0x210] sm:$0xff] }
  0x37   : > { %759 = vst [vmem:[%s1003_s25 + $0x160] sm:$0xff] %v631_v23  ;;  %760 = vst [vmem:[%s1003_s25 + $0x168] sm:$0xff] %v632_v24  ;;  %v634_v32 = vmax.f32 %v506_v25, 0.0  ;;  %v372_v35 = vmul.f32 %v978_v8, %v232_v21  ;;  %v507_v36 = vadd.f32 %v976_v7, %v367_v28  ;;  %v508_v37 = vadd.f32 %v980_v9, %v368_v29  ;;  %v246_v23 = vld [vmem:[%s972_s22 + $0x218] sm:$0xff]  ;;  %v247_v24 = vld [vmem:[%s972_s22 + $0x220] sm:$0xff] }
  0x38   : > { %761 = vst [vmem:[%s1003_s25 + $0x170] sm:$0xff] %v633_v27  ;;  %v509_v38 = vadd.f32 %v976_v7, %v369_v30  ;;  %v373_v39 = vmul.f32 %v974_v6, %v233_v26  ;;  %v510_v40 = vadd.f32 %v980_v9, %v370_v33  ;;  %v511_v41 = vadd.f32 %v976_v7, %v371_v34  ;;  %v248_v25 = vld [vmem:[%s972_s22 + $0x228] sm:$0xff]  ;;  %v249_v30 = vld [vmem:[%s972_s22 + $0x230] sm:$0xff] }
  0x39   : > { %762 = vst [vmem:[%s1003_s25 + $0x178] sm:$0xff] %v634_v32  ;;  %v512_v42 = vadd.f32 %v980_v9, %v372_v35  ;;  %v374_v43 = vmul.f32 %v978_v8, %v234_v31  ;;  %v635_v47 = vmax.f32 %v507_v36, 0.0  ;;  %v636_v48 = vmax.f32 %v508_v37, 0.0  ;;  %v250_v35 = vld [vmem:[%s972_s22 + $0x238] sm:$0xff] }
  0x3a   : > { %v637_v49 = vmax.f32 %v509_v38, 0.0  ;;  %v513_v50 = vadd.f32 %v976_v7, %v373_v39  ;;  %v638_v54 = vmax.f32 %v510_v40, 0.0  ;;  %v639_v55 = vmax.f32 %v511_v41, 0.0 }
  0x3b   : > { %v640_v56 = vmax.f32 %v512_v42, 0.0  ;;  %v514_v57 = vadd.f32 %v980_v9, %v374_v43  ;;  %763 = vst [vmem:[%s1003_s25 + $0x180] sm:$0xff] %v635_v47  ;;  %764 = vst [vmem:[%s1003_s25 + $0x188] sm:$0xff] %v636_v48  ;;  %v375_v60 = vmul.f32 %v974_v6, %v235_v44  ;;  %v376_v61 = vmul.f32 %v978_v8, %v236_v45  ;;  %v251_v48 = vld [vmem:[%s972_s22 + $0x240] sm:$0xff] }
  0x3c   : > { %765 = vst [vmem:[%s1003_s25 + $0x190] sm:$0xff] %v637_v49  ;;  %v641_v59 = vmax.f32 %v513_v50, 0.0  ;;  %v377_v62 = vmul.f32 %v974_v6, %v237_v46  ;;  %766 = vst [vmem:[%s1003_s25 + $0x198] sm:$0xff] %v638_v54  ;;  %v378_v1 = vmul.f32 %v978_v8, %v238_v51  ;;  %v379_v2 = vmul.f32 %v974_v6, %v239_v52  ;;  %v252_v49 = vld [vmem:[%s972_s22 + $0x248] sm:$0xff]  ;;  %v253_v50 = vld [vmem:[%s972_s22 + $0x250] sm:$0xff] }
  0x3d   : > { %767 = vst [vmem:[%s1003_s25 + $0x1a0] sm:$0xff] %v639_v55  ;;  %768 = vst [vmem:[%s1003_s25 + $0x1a8] sm:$0xff] %v640_v56  ;;  %v642_v0 = vmax.f32 %v514_v57, 0.0  ;;  %v380_v3 = vmul.f32 %v978_v8, %v240_v53  ;;  %v515_v4 = vadd.f32 %v976_v7, %v375_v60  ;;  %v516_v5 = vadd.f32 %v980_v9, %v376_v61  ;;  %v254_v55 = vld [vmem:[%s972_s22 + $0x258] sm:$0xff]  ;;  %v255_v56 = vld [vmem:[%s972_s22 + $0x260] sm:$0xff] }
  0x3e   : > { %769 = vst [vmem:[%s1003_s25 + $0x1b0] sm:$0xff] %v641_v59  ;;  %v517_v10 = vadd.f32 %v976_v7, %v377_v62  ;;  %v381_v11 = vmul.f32 %v974_v6, %v241_v58  ;;  %v518_v12 = vadd.f32 %v980_v9, %v378_v1  ;;  %v519_v13 = vadd.f32 %v976_v7, %v379_v2  ;;  %v256_v57 = vld [vmem:[%s972_s22 + $0x268] sm:$0xff]  ;;  %v257_v62 = vld [vmem:[%s972_s22 + $0x270] sm:$0xff] }
  0x3f   : > { %770 = vst [vmem:[%s1003_s25 + $0x1b8] sm:$0xff] %v642_v0  ;;  %v520_v14 = vadd.f32 %v980_v9, %v380_v3  ;;  %v382_v15 = vmul.f32 %v978_v8, %v242_v63  ;;  %v643_v19 = vmax.f32 %v515_v4, 0.0  ;;  %v644_v20 = vmax.f32 %v516_v5, 0.0  ;;  %v258_v3 = vld [vmem:[%s972_s22 + $0x278] sm:$0xff] }
  0x40   : > { %v645_v21 = vmax.f32 %v517_v10, 0.0  ;;  %v521_v22 = vadd.f32 %v976_v7, %v381_v11  ;;  %v646_v26 = vmax.f32 %v518_v12, 0.0  ;;  %v647_v27 = vmax.f32 %v519_v13, 0.0 }
  0x41   : > { %v648_v28 = vmax.f32 %v520_v14, 0.0  ;;  %v522_v29 = vadd.f32 %v980_v9, %v382_v15  ;;  %771 = vst [vmem:[%s1003_s25 + $0x1c0] sm:$0xff] %v643_v19  ;;  %772 = vst [vmem:[%s1003_s25 + $0x1c8] sm:$0xff] %v644_v20  ;;  %v383_v32 = vmul.f32 %v974_v6, %v243_v16  ;;  %v384_v33 = vmul.f32 %v978_v8, %v244_v17  ;;  %v259_v20 = vld [vmem:[%s972_s22 + $0x280] sm:$0xff] }
  0x42   : > { %773 = vst [vmem:[%s1003_s25 + $0x1d0] sm:$0xff] %v645_v21  ;;  %v649_v31 = vmax.f32 %v521_v22, 0.0  ;;  %v385_v34 = vmul.f32 %v974_v6, %v245_v18  ;;  %774 = vst [vmem:[%s1003_s25 + $0x1d8] sm:$0xff] %v646_v26  ;;  %v386_v37 = vmul.f32 %v978_v8, %v246_v23  ;;  %v387_v38 = vmul.f32 %v974_v6, %v247_v24  ;;  %v260_v21 = vld [vmem:[%s972_s22 + $0x288] sm:$0xff]  ;;  %v261_v22 = vld [vmem:[%s972_s22 + $0x290] sm:$0xff] }
  0x43   : > { %775 = vst [vmem:[%s1003_s25 + $0x1e0] sm:$0xff] %v647_v27  ;;  %776 = vst [vmem:[%s1003_s25 + $0x1e8] sm:$0xff] %v648_v28  ;;  %v650_v36 = vmax.f32 %v522_v29, 0.0  ;;  %v388_v39 = vmul.f32 %v978_v8, %v248_v25  ;;  %v523_v40 = vadd.f32 %v976_v7, %v383_v32  ;;  %v524_v41 = vadd.f32 %v980_v9, %v384_v33  ;;  %v262_v27 = vld [vmem:[%s972_s22 + $0x298] sm:$0xff]  ;;  %v263_v28 = vld [vmem:[%s972_s22 + $0x2a0] sm:$0xff] }
  0x44   : > { %777 = vst [vmem:[%s1003_s25 + $0x1f0] sm:$0xff] %v649_v31  ;;  %v525_v42 = vadd.f32 %v976_v7, %v385_v34  ;;  %v389_v43 = vmul.f32 %v974_v6, %v249_v30  ;;  %v526_v44 = vadd.f32 %v980_v9, %v386_v37  ;;  %v527_v45 = vadd.f32 %v976_v7, %v387_v38  ;;  %v264_v29 = vld [vmem:[%s972_s22 + $0x2a8] sm:$0xff]  ;;  %v265_v34 = vld [vmem:[%s972_s22 + $0x2b0] sm:$0xff] }
  0x45   : > { %778 = vst [vmem:[%s1003_s25 + $0x1f8] sm:$0xff] %v650_v36  ;;  %v528_v46 = vadd.f32 %v980_v9, %v388_v39  ;;  %v390_v47 = vmul.f32 %v978_v8, %v250_v35  ;;  %v651_v51 = vmax.f32 %v523_v40, 0.0  ;;  %v652_v52 = vmax.f32 %v524_v41, 0.0  ;;  %v266_v39 = vld [vmem:[%s972_s22 + $0x2b8] sm:$0xff] }
  0x46   : > { %v653_v53 = vmax.f32 %v525_v42, 0.0  ;;  %v529_v54 = vadd.f32 %v976_v7, %v389_v43  ;;  %v654_v58 = vmax.f32 %v526_v44, 0.0  ;;  %v655_v59 = vmax.f32 %v527_v45, 0.0 }
  0x47   : > { %v656_v60 = vmax.f32 %v528_v46, 0.0  ;;  %v530_v61 = vadd.f32 %v980_v9, %v390_v47  ;;  %779 = vst [vmem:[%s1003_s25 + $0x200] sm:$0xff] %v651_v51  ;;  %780 = vst [vmem:[%s1003_s25 + $0x208] sm:$0xff] %v652_v52  ;;  %v391_v0 = vmul.f32 %v974_v6, %v251_v48  ;;  %v392_v1 = vmul.f32 %v978_v8, %v252_v49  ;;  %v267_v52 = vld [vmem:[%s972_s22 + $0x2c0] sm:$0xff] }
  0x48   : > { %781 = vst [vmem:[%s1003_s25 + $0x210] sm:$0xff] %v653_v53  ;;  %v657_v63 = vmax.f32 %v529_v54, 0.0  ;;  %v393_v2 = vmul.f32 %v974_v6, %v253_v50  ;;  %782 = vst [vmem:[%s1003_s25 + $0x218] sm:$0xff] %v654_v58  ;;  %v394_v5 = vmul.f32 %v978_v8, %v254_v55  ;;  %v395_v10 = vmul.f32 %v974_v6, %v255_v56  ;;  %v268_v53 = vld [vmem:[%s972_s22 + $0x2c8] sm:$0xff]  ;;  %v269_v54 = vld [vmem:[%s972_s22 + $0x2d0] sm:$0xff] }
  0x49   : > { %783 = vst [vmem:[%s1003_s25 + $0x220] sm:$0xff] %v655_v59  ;;  %784 = vst [vmem:[%s1003_s25 + $0x228] sm:$0xff] %v656_v60  ;;  %v658_v4 = vmax.f32 %v530_v61, 0.0  ;;  %v396_v11 = vmul.f32 %v978_v8, %v256_v57  ;;  %v531_v12 = vadd.f32 %v976_v7, %v391_v0  ;;  %v532_v13 = vadd.f32 %v980_v9, %v392_v1  ;;  %v270_v59 = vld [vmem:[%s972_s22 + $0x2d8] sm:$0xff]  ;;  %v271_v60 = vld [vmem:[%s972_s22 + $0x2e0] sm:$0xff] }
  0x4a   : > { %785 = vst [vmem:[%s1003_s25 + $0x230] sm:$0xff] %v657_v63  ;;  %v533_v14 = vadd.f32 %v976_v7, %v393_v2  ;;  %v397_v15 = vmul.f32 %v974_v6, %v257_v62  ;;  %v534_v16 = vadd.f32 %v980_v9, %v394_v5  ;;  %v535_v17 = vadd.f32 %v976_v7, %v395_v10  ;;  %v272_v61 = vld [vmem:[%s972_s22 + $0x2e8] sm:$0xff]  ;;  %v273_v2 = vld [vmem:[%s972_s22 + $0x2f0] sm:$0xff] }
  0x4b   : > { %786 = vst [vmem:[%s1003_s25 + $0x238] sm:$0xff] %v658_v4  ;;  %v536_v18 = vadd.f32 %v980_v9, %v396_v11  ;;  %v398_v19 = vmul.f32 %v978_v8, %v258_v3  ;;  %v659_v23 = vmax.f32 %v531_v12, 0.0  ;;  %v660_v24 = vmax.f32 %v532_v13, 0.0  ;;  %v274_v11 = vld [vmem:[%s972_s22 + $0x2f8] sm:$0xff] }
  0x4c   : > { %v661_v25 = vmax.f32 %v533_v14, 0.0  ;;  %v537_v26 = vadd.f32 %v976_v7, %v397_v15  ;;  %v662_v30 = vmax.f32 %v534_v16, 0.0  ;;  %v663_v31 = vmax.f32 %v535_v17, 0.0 }
  0x4d   : > { %v664_v32 = vmax.f32 %v536_v18, 0.0  ;;  %v538_v33 = vadd.f32 %v980_v9, %v398_v19  ;;  %787 = vst [vmem:[%s1003_s25 + $0x240] sm:$0xff] %v659_v23  ;;  %788 = vst [vmem:[%s1003_s25 + $0x248] sm:$0xff] %v660_v24  ;;  %v399_v36 = vmul.f32 %v974_v6, %v259_v20  ;;  %v400_v37 = vmul.f32 %v978_v8, %v260_v21  ;;  %v275_v24 = vld [vmem:[%s972_s22 + $0x300] sm:$0xff] }
  0x4e   : > { %789 = vst [vmem:[%s1003_s25 + $0x250] sm:$0xff] %v661_v25  ;;  %v665_v35 = vmax.f32 %v537_v26, 0.0  ;;  %v401_v38 = vmul.f32 %v974_v6, %v261_v22  ;;  %790 = vst [vmem:[%s1003_s25 + $0x258] sm:$0xff] %v662_v30  ;;  %v402_v41 = vmul.f32 %v978_v8, %v262_v27  ;;  %v403_v42 = vmul.f32 %v974_v6, %v263_v28  ;;  %v276_v25 = vld [vmem:[%s972_s22 + $0x308] sm:$0xff]  ;;  %v277_v26 = vld [vmem:[%s972_s22 + $0x310] sm:$0xff] }
  0x4f   : > { %791 = vst [vmem:[%s1003_s25 + $0x260] sm:$0xff] %v663_v31  ;;  %792 = vst [vmem:[%s1003_s25 + $0x268] sm:$0xff] %v664_v32  ;;  %v666_v40 = vmax.f32 %v538_v33, 0.0  ;;  %v404_v43 = vmul.f32 %v978_v8, %v264_v29  ;;  %v539_v44 = vadd.f32 %v976_v7, %v399_v36  ;;  %v540_v45 = vadd.f32 %v980_v9, %v400_v37  ;;  %v278_v31 = vld [vmem:[%s972_s22 + $0x318] sm:$0xff]  ;;  %v279_v32 = vld [vmem:[%s972_s22 + $0x320] sm:$0xff] }
  0x50   : > { %793 = vst [vmem:[%s1003_s25 + $0x270] sm:$0xff] %v665_v35  ;;  %v541_v46 = vadd.f32 %v976_v7, %v401_v38  ;;  %v405_v47 = vmul.f32 %v974_v6, %v265_v34  ;;  %v542_v48 = vadd.f32 %v980_v9, %v402_v41  ;;  %v543_v49 = vadd.f32 %v976_v7, %v403_v42  ;;  %v280_v33 = vld [vmem:[%s972_s22 + $0x328] sm:$0xff]  ;;  %v281_v38 = vld [vmem:[%s972_s22 + $0x330] sm:$0xff] }
  0x51   : > { %794 = vst [vmem:[%s1003_s25 + $0x278] sm:$0xff] %v666_v40  ;;  %v544_v50 = vadd.f32 %v980_v9, %v404_v43  ;;  %v406_v51 = vmul.f32 %v978_v8, %v266_v39  ;;  %v667_v55 = vmax.f32 %v539_v44, 0.0  ;;  %v668_v56 = vmax.f32 %v540_v45, 0.0  ;;  %v282_v43 = vld [vmem:[%s972_s22 + $0x338] sm:$0xff] }
  0x52   : > { %v669_v57 = vmax.f32 %v541_v46, 0.0  ;;  %v545_v58 = vadd.f32 %v976_v7, %v405_v47  ;;  %v670_v62 = vmax.f32 %v542_v48, 0.0  ;;  %v671_v63 = vmax.f32 %v543_v49, 0.0 }
  0x53   : > { %v672_v0 = vmax.f32 %v544_v50, 0.0  ;;  %v546_v1 = vadd.f32 %v980_v9, %v406_v51  ;;  %795 = vst [vmem:[%s1003_s25 + $0x280] sm:$0xff] %v667_v55  ;;  %796 = vst [vmem:[%s1003_s25 + $0x288] sm:$0xff] %v668_v56  ;;  %v407_v4 = vmul.f32 %v974_v6, %v267_v52  ;;  %v408_v5 = vmul.f32 %v978_v8, %v268_v53  ;;  %v283_v56 = vld [vmem:[%s972_s22 + $0x340] sm:$0xff] }
  0x54   : > { %797 = vst [vmem:[%s1003_s25 + $0x290] sm:$0xff] %v669_v57  ;;  %v673_v3 = vmax.f32 %v545_v58, 0.0  ;;  %v409_v10 = vmul.f32 %v974_v6, %v269_v54  ;;  %798 = vst [vmem:[%s1003_s25 + $0x298] sm:$0xff] %v670_v62  ;;  %v410_v13 = vmul.f32 %v978_v8, %v270_v59  ;;  %v411_v14 = vmul.f32 %v974_v6, %v271_v60  ;;  %v284_v57 = vld [vmem:[%s972_s22 + $0x348] sm:$0xff]  ;;  %v285_v58 = vld [vmem:[%s972_s22 + $0x350] sm:$0xff] }
  0x55   : > { %799 = vst [vmem:[%s1003_s25 + $0x2a0] sm:$0xff] %v671_v63  ;;  %800 = vst [vmem:[%s1003_s25 + $0x2a8] sm:$0xff] %v672_v0  ;;  %v674_v12 = vmax.f32 %v546_v1, 0.0  ;;  %v412_v15 = vmul.f32 %v978_v8, %v272_v61  ;;  %v547_v16 = vadd.f32 %v976_v7, %v407_v4  ;;  %v548_v17 = vadd.f32 %v980_v9, %v408_v5  ;;  %v286_v63 = vld [vmem:[%s972_s22 + $0x358] sm:$0xff]  ;;  %v287_v0 = vld [vmem:[%s972_s22 + $0x360] sm:$0xff] }
  0x56   : > { %801 = vst [vmem:[%s1003_s25 + $0x2b0] sm:$0xff] %v673_v3  ;;  %v549_v18 = vadd.f32 %v976_v7, %v409_v10  ;;  %v413_v19 = vmul.f32 %v974_v6, %v273_v2  ;;  %v550_v20 = vadd.f32 %v980_v9, %v410_v13  ;;  %v551_v21 = vadd.f32 %v976_v7, %v411_v14  ;;  %v288_v1 = vld [vmem:[%s972_s22 + $0x368] sm:$0xff]  ;;  %v289_v10 = vld [vmem:[%s972_s22 + $0x370] sm:$0xff] }
  0x57   : > { %802 = vst [vmem:[%s1003_s25 + $0x2b8] sm:$0xff] %v674_v12  ;;  %v552_v22 = vadd.f32 %v980_v9, %v412_v15  ;;  %v414_v23 = vmul.f32 %v978_v8, %v274_v11  ;;  %v675_v27 = vmax.f32 %v547_v16, 0.0  ;;  %v676_v28 = vmax.f32 %v548_v17, 0.0  ;;  %v290_v15 = vld [vmem:[%s972_s22 + $0x378] sm:$0xff] }
  0x58   : > { %v677_v29 = vmax.f32 %v549_v18, 0.0  ;;  %v553_v30 = vadd.f32 %v976_v7, %v413_v19  ;;  %v678_v34 = vmax.f32 %v550_v20, 0.0  ;;  %v679_v35 = vmax.f32 %v551_v21, 0.0 }
  0x59   : > { %v680_v36 = vmax.f32 %v552_v22, 0.0  ;;  %v554_v37 = vadd.f32 %v980_v9, %v414_v23  ;;  %803 = vst [vmem:[%s1003_s25 + $0x2c0] sm:$0xff] %v675_v27  ;;  %804 = vst [vmem:[%s1003_s25 + $0x2c8] sm:$0xff] %v676_v28  ;;  %v415_v40 = vmul.f32 %v974_v6, %v275_v24  ;;  %v416_v41 = vmul.f32 %v978_v8, %v276_v25  ;;  %v291_v28 = vld [vmem:[%s972_s22 + $0x380] sm:$0xff] }
  0x5a   : > { %805 = vst [vmem:[%s1003_s25 + $0x2d0] sm:$0xff] %v677_v29  ;;  %v681_v39 = vmax.f32 %v553_v30, 0.0  ;;  %v417_v42 = vmul.f32 %v974_v6, %v277_v26  ;;  %806 = vst [vmem:[%s1003_s25 + $0x2d8] sm:$0xff] %v678_v34  ;;  %v418_v45 = vmul.f32 %v978_v8, %v278_v31  ;;  %v419_v46 = vmul.f32 %v974_v6, %v279_v32  ;;  %v292_v29 = vld [vmem:[%s972_s22 + $0x388] sm:$0xff]  ;;  %v293_v30 = vld [vmem:[%s972_s22 + $0x390] sm:$0xff] }
  0x5b   : > { %807 = vst [vmem:[%s1003_s25 + $0x2e0] sm:$0xff] %v679_v35  ;;  %808 = vst [vmem:[%s1003_s25 + $0x2e8] sm:$0xff] %v680_v36  ;;  %v682_v44 = vmax.f32 %v554_v37, 0.0  ;;  %v420_v47 = vmul.f32 %v978_v8, %v280_v33  ;;  %v555_v48 = vadd.f32 %v976_v7, %v415_v40  ;;  %v556_v49 = vadd.f32 %v980_v9, %v416_v41  ;;  %v294_v35 = vld [vmem:[%s972_s22 + $0x398] sm:$0xff]  ;;  %v295_v36 = vld [vmem:[%s972_s22 + $0x3a0] sm:$0xff] }
  0x5c   : > { %809 = vst [vmem:[%s1003_s25 + $0x2f0] sm:$0xff] %v681_v39  ;;  %v557_v50 = vadd.f32 %v976_v7, %v417_v42  ;;  %v421_v51 = vmul.f32 %v974_v6, %v281_v38  ;;  %v558_v52 = vadd.f32 %v980_v9, %v418_v45  ;;  %v559_v53 = vadd.f32 %v976_v7, %v419_v46  ;;  %v296_v37 = vld [vmem:[%s972_s22 + $0x3a8] sm:$0xff]  ;;  %v297_v42 = vld [vmem:[%s972_s22 + $0x3b0] sm:$0xff] }
  0x5d   : > { %810 = vst [vmem:[%s1003_s25 + $0x2f8] sm:$0xff] %v682_v44  ;;  %v560_v54 = vadd.f32 %v980_v9, %v420_v47  ;;  %v422_v55 = vmul.f32 %v978_v8, %v282_v43  ;;  %v683_v59 = vmax.f32 %v555_v48, 0.0  ;;  %v684_v60 = vmax.f32 %v556_v49, 0.0  ;;  %v298_v47 = vld [vmem:[%s972_s22 + $0x3b8] sm:$0xff] }
  0x5e   : > { %v685_v61 = vmax.f32 %v557_v50, 0.0  ;;  %v561_v62 = vadd.f32 %v976_v7, %v421_v51  ;;  %v686_v2 = vmax.f32 %v558_v52, 0.0  ;;  %v687_v3 = vmax.f32 %v559_v53, 0.0 }
  0x5f   : > { %v688_v4 = vmax.f32 %v560_v54, 0.0  ;;  %v562_v5 = vadd.f32 %v980_v9, %v422_v55  ;;  %811 = vst [vmem:[%s1003_s25 + $0x300] sm:$0xff] %v683_v59  ;;  %812 = vst [vmem:[%s1003_s25 + $0x308] sm:$0xff] %v684_v60  ;;  %v423_v12 = vmul.f32 %v974_v6, %v283_v56  ;;  %v424_v13 = vmul.f32 %v978_v8, %v284_v57  ;;  %v299_v60 = vld [vmem:[%s972_s22 + $0x3c0] sm:$0xff] }
  0x60   : > { %813 = vst [vmem:[%s1003_s25 + $0x310] sm:$0xff] %v685_v61  ;;  %v689_v11 = vmax.f32 %v561_v62, 0.0  ;;  %v425_v14 = vmul.f32 %v974_v6, %v285_v58  ;;  %814 = vst [vmem:[%s1003_s25 + $0x318] sm:$0xff] %v686_v2  ;;  %v426_v17 = vmul.f32 %v978_v8, %v286_v63  ;;  %v427_v18 = vmul.f32 %v974_v6, %v287_v0  ;;  %v300_v61 = vld [vmem:[%s972_s22 + $0x3c8] sm:$0xff]  ;;  %v301_v62 = vld [vmem:[%s972_s22 + $0x3d0] sm:$0xff] }
  0x61   : > { %815 = vst [vmem:[%s1003_s25 + $0x320] sm:$0xff] %v687_v3  ;;  %816 = vst [vmem:[%s1003_s25 + $0x328] sm:$0xff] %v688_v4  ;;  %v690_v16 = vmax.f32 %v562_v5, 0.0  ;;  %v428_v19 = vmul.f32 %v978_v8, %v288_v1  ;;  %v563_v20 = vadd.f32 %v976_v7, %v423_v12  ;;  %v564_v21 = vadd.f32 %v980_v9, %v424_v13  ;;  %v302_v3 = vld [vmem:[%s972_s22 + $0x3d8] sm:$0xff]  ;;  %v303_v4 = vld [vmem:[%s972_s22 + $0x3e0] sm:$0xff] }
  0x62   : > { %817 = vst [vmem:[%s1003_s25 + $0x330] sm:$0xff] %v689_v11  ;;  %v565_v22 = vadd.f32 %v976_v7, %v425_v14  ;;  %v429_v23 = vmul.f32 %v974_v6, %v289_v10  ;;  %v566_v24 = vadd.f32 %v980_v9, %v426_v17  ;;  %v567_v25 = vadd.f32 %v976_v7, %v427_v18  ;;  %v304_v5 = vld [vmem:[%s972_s22 + $0x3e8] sm:$0xff]  ;;  %v305_v14 = vld [vmem:[%s972_s22 + $0x3f0] sm:$0xff] }
  0x63   : > { %818 = vst [vmem:[%s1003_s25 + $0x338] sm:$0xff] %v690_v16  ;;  %v568_v26 = vadd.f32 %v980_v9, %v428_v19  ;;  %v430_v27 = vmul.f32 %v978_v8, %v290_v15  ;;  %v691_v31 = vmax.f32 %v563_v20, 0.0  ;;  %v692_v32 = vmax.f32 %v564_v21, 0.0  ;;  %v306_v19 = vld [vmem:[%s972_s22 + $0x3f8] sm:$0xff] }
  0x64   : > { %v693_v33 = vmax.f32 %v565_v22, 0.0  ;;  %v569_v34 = vadd.f32 %v976_v7, %v429_v23  ;;  %v694_v38 = vmax.f32 %v566_v24, 0.0  ;;  %v695_v39 = vmax.f32 %v567_v25, 0.0 }
  0x65   : > { %v696_v40 = vmax.f32 %v568_v26, 0.0  ;;  %v570_v41 = vadd.f32 %v980_v9, %v430_v27  ;;  %819 = vst [vmem:[%s1003_s25 + $0x340] sm:$0xff] %v691_v31  ;;  %820 = vst [vmem:[%s1003_s25 + $0x348] sm:$0xff] %v692_v32  ;;  %v431_v44 = vmul.f32 %v974_v6, %v291_v28  ;;  %v432_v45 = vmul.f32 %v978_v8, %v292_v29 }
  0x66   : > { %821 = vst [vmem:[%s1003_s25 + $0x350] sm:$0xff] %v693_v33  ;;  %v697_v43 = vmax.f32 %v569_v34, 0.0  ;;  %v433_v46 = vmul.f32 %v974_v6, %v293_v30  ;;  %822 = vst [vmem:[%s1003_s25 + $0x358] sm:$0xff] %v694_v38  ;;  %v434_v49 = vmul.f32 %v978_v8, %v294_v35  ;;  %v435_v50 = vmul.f32 %v974_v6, %v295_v36 }
  0x67   : > { %823 = vst [vmem:[%s1003_s25 + $0x360] sm:$0xff] %v695_v39  ;;  %824 = vst [vmem:[%s1003_s25 + $0x368] sm:$0xff] %v696_v40  ;;  %v698_v48 = vmax.f32 %v570_v41, 0.0  ;;  %v436_v51 = vmul.f32 %v978_v8, %v296_v37  ;;  %v571_v52 = vadd.f32 %v976_v7, %v431_v44  ;;  %v572_v53 = vadd.f32 %v980_v9, %v432_v45 }
  0x68   : > { %825 = vst [vmem:[%s1003_s25 + $0x370] sm:$0xff] %v697_v43  ;;  %v573_v54 = vadd.f32 %v976_v7, %v433_v46  ;;  %v437_v55 = vmul.f32 %v974_v6, %v297_v42  ;;  %v574_v56 = vadd.f32 %v980_v9, %v434_v49  ;;  %v575_v57 = vadd.f32 %v976_v7, %v435_v50 }
  0x69   : > { %826 = vst [vmem:[%s1003_s25 + $0x378] sm:$0xff] %v698_v48  ;;  %v576_v58 = vadd.f32 %v980_v9, %v436_v51  ;;  %v438_v59 = vmul.f32 %v978_v8, %v298_v47  ;;  %v699_v63 = vmax.f32 %v571_v52, 0.0  ;;  %v700_v0 = vmax.f32 %v572_v53, 0.0 }
  0x6a   : > { %v701_v1 = vmax.f32 %v573_v54, 0.0  ;;  %v577_v2 = vadd.f32 %v976_v7, %v437_v55  ;;  %v702_v10 = vmax.f32 %v574_v56, 0.0  ;;  %v703_v11 = vmax.f32 %v575_v57, 0.0 }
  0x6b   : > { %v704_v12 = vmax.f32 %v576_v58, 0.0  ;;  %v578_v13 = vadd.f32 %v980_v9, %v438_v59  ;;  %827 = vst [vmem:[%s1003_s25 + $0x380] sm:$0xff] %v699_v63  ;;  %828 = vst [vmem:[%s1003_s25 + $0x388] sm:$0xff] %v700_v0  ;;  %v439_v16 = vmul.f32 %v974_v6, %v299_v60  ;;  %v440_v17 = vmul.f32 %v978_v8, %v300_v61 }
  0x6c   : > { %829 = vst [vmem:[%s1003_s25 + $0x390] sm:$0xff] %v701_v1  ;;  %v705_v15 = vmax.f32 %v577_v2, 0.0  ;;  %v441_v18 = vmul.f32 %v974_v6, %v301_v62  ;;  %830 = vst [vmem:[%s1003_s25 + $0x398] sm:$0xff] %v702_v10  ;;  %v442_v21 = vmul.f32 %v978_v8, %v302_v3  ;;  %v443_v22 = vmul.f32 %v974_v6, %v303_v4 }
  0x6d   : > { %831 = vst [vmem:[%s1003_s25 + $0x3a0] sm:$0xff] %v703_v11  ;;  %832 = vst [vmem:[%s1003_s25 + $0x3a8] sm:$0xff] %v704_v12  ;;  %v706_v20 = vmax.f32 %v578_v13, 0.0  ;;  %v444_v23 = vmul.f32 %v978_v8, %v304_v5  ;;  %v579_v24 = vadd.f32 %v976_v7, %v439_v16  ;;  %v580_v25 = vadd.f32 %v980_v9, %v440_v17 }
  0x6e   : > { %833 = vst [vmem:[%s1003_s25 + $0x3b0] sm:$0xff] %v705_v15  ;;  %v581_v26 = vadd.f32 %v976_v7, %v441_v18  ;;  %v445_v27 = vmul.f32 %v974_v6, %v305_v14  ;;  %v582_v28 = vadd.f32 %v980_v9, %v442_v21  ;;  %v583_v29 = vadd.f32 %v976_v7, %v443_v22 }
  0x6f   : > { %834 = vst [vmem:[%s1003_s25 + $0x3b8] sm:$0xff] %v706_v20  ;;  %v584_v30 = vadd.f32 %v980_v9, %v444_v23  ;;  %v446_v31 = vmul.f32 %v978_v8, %v306_v19  ;;  %v707_v32 = vmax.f32 %v579_v24, 0.0  ;;  %v708_v33 = vmax.f32 %v580_v25, 0.0 }
  0x70   : > { %v709_v34 = vmax.f32 %v581_v26, 0.0  ;;  %v585_v6 = vadd.f32 %v976_v7, %v445_v27  ;;  %v710_v35 = vmax.f32 %v582_v28, 0.0  ;;  %v711_v36 = vmax.f32 %v583_v29, 0.0 }
  0x71   : > { %v712_v37 = vmax.f32 %v584_v30, 0.0  ;;  %v586_v38 = vadd.f32 %v980_v9, %v446_v31  ;;  %835 = vst [vmem:[%s1003_s25 + $0x3c0] sm:$0xff] %v707_v32  ;;  %836 = vst [vmem:[%s1003_s25 + $0x3c8] sm:$0xff] %v708_v33 }
  0x72   : > { %837 = vst [vmem:[%s1003_s25 + $0x3d0] sm:$0xff] %v709_v34  ;;  %v713_v39 = vmax.f32 %v585_v6, 0.0  ;;  %838 = vst [vmem:[%s1003_s25 + $0x3d8] sm:$0xff] %v710_v35 }
  0x73   : > { %839 = vst [vmem:[%s1003_s25 + $0x3e0] sm:$0xff] %v711_v36  ;;  %840 = vst [vmem:[%s1003_s25 + $0x3e8] sm:$0xff] %v712_v37  ;;  %v714_v8 = vmax.f32 %v586_v38, 0.0 }
  0x74   : > { %841 = vst [vmem:[%s1003_s25 + $0x3f0] sm:$0xff] %v713_v39 }
  0x75   : > { %842 = vst [vmem:[%s1003_s25 + $0x3f8] sm:$0xff] %v714_v8 }
  0x76 PF: > { %s13_s12 = sadd.s32 1, %s930_s12  }
  0x77   : > { %p10_p4 = scmp.ge.s32.totalorder %s13_s12, 4  }
  0x79   :  { %12 = sbr.rel (!%p10_p4) target bundleno = 1 (0x1), region = 62 }

// kernel: my_compgcn_forward.17
= control target key start
LH: loop header
LB: loop body
LE: loop exit
PB: predicated region body
PF: predicated region fallthrough
CT: control target
= control target key end

     0   :  { %s1165_s12 = smov 0   ;;  %s1167_s13 = smov 0   ;;  %s1307_s0 = inlined_call_operand.vmem [shape: bf16[8,39424], index: 0, kind: input, shape index: {}]   ;;  %s1308_s1 = inlined_call_operand.vmem [shape: bf16[39424,256], index: 1, kind: input, shape index: {}]   ;;  %s1309_s2 = inlined_call_operand.vmem [shape: f32[1,256], index: 2, kind: input, shape index: {}]   ;;  %s1310_s3 = inlined_call_operand.vmem [shape: f32[8,256], index: 3, kind: output, shape index: {}]  }
   0x1   :  { %s1169_s14 = smov 0  }
   0x2 LB: > { %s25_s15 = sadd.s32 1, %s1138_s13  ;;  %p914_p0 = scmp.ge.s32.totalorder %s1142_s14, 1  ;;  %s1142_s14 = sphi %s1169_s14, %s13_s14   ;;  %s1138_s13 = sphi %s1167_s13, %s1312_s13   ;;  %s1134_s12 = sphi %s1165_s12, %s1311_s12  }
   0x3   : > { %p26_p1 = scmp.ge.s32.totalorder %s25_s15, 77  ;;  %p194_p2 = scmp.lt.s32.totalorder %s1142_s14, 78 }
   0x5   : > { %s1314_s15 = smov (%p26_p1, %s25_s15), 0  ;;  %p195_p3 = pnand %p914_p0, %p194_p2 }
   0x6   : > { %s915_s16 = sshll.u32 (!%p195_p3), %s1134_s12, 2  ;;  %s917_s17 = sshll.u32 (!%p195_p3), %s1134_s12, 6 }
   0x7   : > { %198 = sbr.rel (%p195_p3) target bundleno = 318 (0x13e), region = 32  ;;  %p243_p4 = scmp.lt.s32.totalorder (!%p195_p3), %s915_s16, 307 }
   0x8   : > { %p252_p5 = scmp.lt.s32.totalorder (!%p195_p3), %s917_s17, 4927  ;;  %p920_p6 = scmp.ne.s32.totalorder (!%p195_p3), %s1134_s12, 0 }
   0xe   : > { %s1316_s16 = smov (!%p243_p4, %s915_s16), 307  ;;  %s1318_s17 = smov (!%p252_p5, %s917_s17), 4927 }
   0xf   : > { %s916_s18 = sshll.u32 %s1316_s16, 2  ;;  %s994_s22 = sshll.u32 %s1318_s17, 3  ;;  %v1144_v0 = vmov (!%p920_p6), 0.0  }
  0x10   : > { %s1190_s21 = scalar_lea.vmem %s1307_s0, %s916_s18  ;;  %s1195_s25 = scalar_lea.vmem %s1308_s1, %s994_s22  ;;  %281 = vst [vmem:[%s1310_s3] sm:$0xff] (!%p920_p6), %v1144_v0  ;;  %282 = vst [vmem:[%s1310_s3 + $0x8] sm:$0xff] (!%p920_p6), %v1144_v0 }
  0x11   : > { %280 = sbr.rel (%p920_p6) target bundleno = 24 (0x18), region = 36 }
  0x18 PF: > { %v1020_v1 = vld [vmem:[%s1195_s25 + $0x4] ss:$8 sps:$4 sm:$0xff]   ;;  %v1024_v3 = vld [vmem:[%s1195_s25] ss:$8 sps:$4 sm:$0xff]   ;;  %v1026_v5 = vld [vmem:[%s1195_s25 + $0x14] ss:$8 sps:$4 sm:$0xff]  }
  0x19   : > { %v1022_v2 = vld [vmem:[%s1195_s25 + $0x104] ss:$8 sps:$4 sm:$0xff]   ;;  %685 = vmatprep.subr.bf16.mxu0 %v1020_v1  ;;  %v1025_v4 = vld [vmem:[%s1195_s25 + $0x100] ss:$8 sps:$4 sm:$0xff]   ;;  %v1028_v6 = vld [vmem:[%s1195_s25 + $0x114] ss:$8 sps:$4 sm:$0xff]  }
  0x1a   : > { %726 = vmatprep.subr.bf16.mxu1 %v1022_v2  ;;  %686 = vmatpush1.bf16.msra.mxu0 %v1024_v3  ;;  %v1030_v7 = vld [vmem:[%s1195_s25 + $0x10] ss:$8 sps:$4 sm:$0xff]   ;;  %v1032_v9 = vld [vmem:[%s1195_s25 + $0x24] ss:$8 sps:$4 sm:$0xff]   ;;  %v1036_v11 = vld [vmem:[%s1195_s25 + $0x20] ss:$8 sps:$4 sm:$0xff]  }
  0x1b   : > { %727 = vmatpush1.bf16.msra.mxu1 %v1025_v4  ;;  %687 = vmatprep.subr.bf16.mxu0 %v1026_v5  ;;  %v1031_v8 = vld [vmem:[%s1195_s25 + $0x110] ss:$8 sps:$4 sm:$0xff]   ;;  %v1034_v10 = vld [vmem:[%s1195_s25 + $0x124] ss:$8 sps:$4 sm:$0xff]   ;;  %v1037_v12 = vld [vmem:[%s1195_s25 + $0x120] ss:$8 sps:$4 sm:$0xff]  }
  0x1c   : > { %728 = vmatprep.subr.bf16.mxu1 %v1028_v6  ;;  %v1038_v13 = vld [vmem:[%s1195_s25 + $0x34] ss:$8 sps:$4 sm:$0xff]   ;;  %v1042_v15 = vld [vmem:[%s1195_s25 + $0x30] ss:$8 sps:$4 sm:$0xff]   ;;  %v1044_v17 = vld [vmem:[%s1195_s25 + $0x44] ss:$8 sps:$4 sm:$0xff]  }
  0x1d   : > { %v1040_v14 = vld [vmem:[%s1195_s25 + $0x134] ss:$8 sps:$4 sm:$0xff]   ;;  %v1043_v16 = vld [vmem:[%s1195_s25 + $0x130] ss:$8 sps:$4 sm:$0xff]   ;;  %v1046_v18 = vld [vmem:[%s1195_s25 + $0x144] ss:$8 sps:$4 sm:$0xff]  }
  0x1e   : > { %688 = vmatpush1.bf16.msra.mxu0 %v1030_v7  ;;  %v1048_v19 = vld [vmem:[%s1195_s25 + $0x40] ss:$8 sps:$4 sm:$0xff]   ;;  %v1050_v21 = vld [vmem:[%s1195_s25 + $0x54] ss:$8 sps:$4 sm:$0xff]   ;;  %v1054_v23 = vld [vmem:[%s1195_s25 + $0x50] ss:$8 sps:$4 sm:$0xff]  }
  0x1f   : > { %729 = vmatpush1.bf16.msra.mxu1 %v1031_v8  ;;  %689 = vmatprep.subr.bf16.mxu0 %v1032_v9  ;;  %v1049_v20 = vld [vmem:[%s1195_s25 + $0x140] ss:$8 sps:$4 sm:$0xff]   ;;  %v1052_v22 = vld [vmem:[%s1195_s25 + $0x154] ss:$8 sps:$4 sm:$0xff]   ;;  %v1055_v24 = vld [vmem:[%s1195_s25 + $0x150] ss:$8 sps:$4 sm:$0xff]  }
  0x20   : > { %730 = vmatprep.subr.bf16.mxu1 %v1034_v10  ;;  %v1056_v25 = vld [vmem:[%s1195_s25 + $0x64] ss:$8 sps:$4 sm:$0xff]   ;;  %v1060_v27 = vld [vmem:[%s1195_s25 + $0x60] ss:$8 sps:$4 sm:$0xff]   ;;  %v1062_v29 = vld [vmem:[%s1195_s25 + $0x74] ss:$8 sps:$4 sm:$0xff]  }
  0x21   : > { %v1058_v26 = vld [vmem:[%s1195_s25 + $0x164] ss:$8 sps:$4 sm:$0xff]   ;;  %v1061_v28 = vld [vmem:[%s1195_s25 + $0x160] ss:$8 sps:$4 sm:$0xff]   ;;  %v1064_v30 = vld [vmem:[%s1195_s25 + $0x174] ss:$8 sps:$4 sm:$0xff]  }
  0x22   : > { %690 = vmatpush1.bf16.msra.mxu0 %v1036_v11  ;;  %v1066_v31 = vld [vmem:[%s1195_s25 + $0x70] ss:$8 sps:$4 sm:$0xff]   ;;  %v1068_v33 = vld [vmem:[%s1195_s25 + $0x84] ss:$8 sps:$4 sm:$0xff]   ;;  %v1072_v35 = vld [vmem:[%s1195_s25 + $0x80] ss:$8 sps:$4 sm:$0xff]  }
  0x23   : > { %731 = vmatpush1.bf16.msra.mxu1 %v1037_v12  ;;  %691 = vmatprep.subr.bf16.mxu0 %v1038_v13  ;;  %v1067_v32 = vld [vmem:[%s1195_s25 + $0x170] ss:$8 sps:$4 sm:$0xff]   ;;  %v1070_v34 = vld [vmem:[%s1195_s25 + $0x184] ss:$8 sps:$4 sm:$0xff]   ;;  %v1073_v36 = vld [vmem:[%s1195_s25 + $0x180] ss:$8 sps:$4 sm:$0xff]  }
  0x24   : > { %732 = vmatprep.subr.bf16.mxu1 %v1040_v14  ;;  %v1074_v37 = vld [vmem:[%s1195_s25 + $0x94] ss:$8 sps:$4 sm:$0xff]   ;;  %v1078_v39 = vld [vmem:[%s1195_s25 + $0x90] ss:$8 sps:$4 sm:$0xff]   ;;  %v1080_v41 = vld [vmem:[%s1195_s25 + $0xa4] ss:$8 sps:$4 sm:$0xff]  }
  0x25   : > { %v1076_v38 = vld [vmem:[%s1195_s25 + $0x194] ss:$8 sps:$4 sm:$0xff]   ;;  %v1079_v40 = vld [vmem:[%s1195_s25 + $0x190] ss:$8 sps:$4 sm:$0xff]   ;;  %v1082_v42 = vld [vmem:[%s1195_s25 + $0x1a4] ss:$8 sps:$4 sm:$0xff]  }
  0x26   : > { %692 = vmatpush1.bf16.msra.mxu0 %v1042_v15  ;;  %v1084_v43 = vld [vmem:[%s1195_s25 + $0xa0] ss:$8 sps:$4 sm:$0xff]   ;;  %v1086_v45 = vld [vmem:[%s1195_s25 + $0xb4] ss:$8 sps:$4 sm:$0xff]   ;;  %v1090_v50 = vld [vmem:[%s1195_s25 + $0xb0] ss:$8 sps:$4 sm:$0xff]  }
  0x27   : > { %733 = vmatpush1.bf16.msra.mxu1 %v1043_v16  ;;  %693 = vmatprep.subr.bf16.mxu0 %v1044_v17  ;;  %v1085_v44 = vld [vmem:[%s1195_s25 + $0x1a0] ss:$8 sps:$4 sm:$0xff]   ;;  %v1088_v46 = vld [vmem:[%s1195_s25 + $0x1b4] ss:$8 sps:$4 sm:$0xff]   ;;  %v1091_v51 = vld [vmem:[%s1195_s25 + $0x1b0] ss:$8 sps:$4 sm:$0xff]  }
  0x28   : > { %734 = vmatprep.subr.bf16.mxu1 %v1046_v18  ;;  %v285_v47 = vld [vmem:[%s1190_s21] sm:$0xff]  ;;  %v286_v49 = vld [vmem:[%s1190_s21 + $0x8] sm:$0xff]  ;;  %v1098_v57 = vld [vmem:[%s1195_s25 + $0xd4] ss:$8 sps:$4 sm:$0xff]   ;;  %p989_p7 = scmp.ne.s32.totalorder %s1134_s12, 76 }
  0x29   : > { %v922_v48 = vcombine.high %v285_v47, %v285_v47  ;;  %v924_v52 = vcombine.high %v286_v49, %v286_v49  ;;  %v1092_v53 = vld [vmem:[%s1195_s25 + $0xc4] ss:$8 sps:$4 sm:$0xff]   ;;  %v1096_v55 = vld [vmem:[%s1195_s25 + $0xc0] ss:$8 sps:$4 sm:$0xff]   ;;  %v1100_v58 = vld [vmem:[%s1195_s25 + $0x1d4] ss:$8 sps:$4 sm:$0xff]   ;;  %v921_v5 = vcombine.low %v285_v47, %v285_v47  ;;  %v923_v6 = vcombine.low %v286_v49, %v286_v49 }
  0x2a   : > { %694 = vmatpush1.bf16.msra.mxu0 %v1048_v19  ;;  %v1094_v54 = vld [vmem:[%s1195_s25 + $0x1c4] ss:$8 sps:$4 sm:$0xff]   ;;  %v1097_v56 = vld [vmem:[%s1195_s25 + $0x1c0] ss:$8 sps:$4 sm:$0xff]   ;;  %v1102_v59 = vld [vmem:[%s1195_s25 + $0xd0] ss:$8 sps:$4 sm:$0xff]  }
  0x2b   : > { %735 = vmatpush1.bf16.msra.mxu1 %v1049_v20  ;;  %695 = vmatprep.subr.bf16.mxu0 %v1050_v21  ;;  %v1103_v60 = vld [vmem:[%s1195_s25 + $0x1d0] ss:$8 sps:$4 sm:$0xff]   ;;  %v1104_v61 = vld [vmem:[%s1195_s25 + $0xe4] ss:$8 sps:$4 sm:$0xff]   ;;  %v1108_v63 = vld [vmem:[%s1195_s25 + $0xe0] ss:$8 sps:$4 sm:$0xff]   ;;  %v779_v21 = vlaneseq (!%p989_p7) }
  0x2c   : > { %736 = vmatprep.subr.bf16.mxu1 %v1052_v22  ;;  %717 = vmatprep.mubr.bf16.mxu0 %v922_v48  ;;  %v1106_v62 = vld [vmem:[%s1195_s25 + $0x1e4] ss:$8 sps:$4 sm:$0xff]   ;;  %v1109_v0 = vld [vmem:[%s1195_s25 + $0x1e0] ss:$8 sps:$4 sm:$0xff]   ;;  %v1110_v1 = vld [vmem:[%s1195_s25 + $0xf4] ss:$8 sps:$4 sm:$0xff]  }
  0x2d   : > { %758 = vmatprep.mubr.bf16.mxu1 %v924_v52  ;;  %v1112_v2 = vld [vmem:[%s1195_s25 + $0x1f4] ss:$8 sps:$4 sm:$0xff]   ;;  %v1114_v3 = vld [vmem:[%s1195_s25 + $0xf0] ss:$8 sps:$4 sm:$0xff]   ;;  %v283_v8 = vld [vmem:[%s1310_s3] sm:$0xff]  ;;  %v780_v22 = vshrl.u32 (!%p989_p7), %v779_v21, 7 }
  0x2e   : > { %696 = vmatpush1.bf16.msra.mxu0 %v1054_v23  ;;  %v1115_v4 = vld [vmem:[%s1195_s25 + $0x1f0] ss:$8 sps:$4 sm:$0xff]   ;;  %v284_v12 = vld [vmem:[%s1310_s3 + $0x8] sm:$0xff]  ;;  %v777_v23 = vld [vmem:[%s1309_s2] sm:$0x3] (!%p989_p7) }
  0x2f   : > { %737 = vmatpush1.bf16.msra.mxu1 %v1055_v24  ;;  %697 = vmatprep.subr.bf16.mxu0 %v1056_v25  ;;  %v781_v24 = vsub.s32 (!%p989_p7), 0, %v780_v22  ;;  %v785_v25 = vsub.s32 (!%p989_p7), 1, %v780_v22 }
  0x30   : > { %738 = vmatprep.subr.bf16.mxu1 %v1058_v26 }
  0x32   : > { %698 = vmatpush1.bf16.msra.mxu0 %v1060_v27 }
  0x33   : > { %739 = vmatpush1.bf16.msra.mxu1 %v1061_v28  ;;  %699 = vmatprep.subr.bf16.mxu0 %v1062_v29  ;;  %v782_v28 = vrot.slane (!%p989_p7), %v777_v23, %v781_v24  ;;  %v786_v29 = vrot.slane (!%p989_p7), %v777_v23, %v785_v25 }
  0x34   : > { %740 = vmatprep.subr.bf16.mxu1 %v1064_v30 }
  0x36   : > { %700 = vmatpush1.bf16.msra.mxu0 %v1066_v31 }
  0x37   : > { %741 = vmatpush1.bf16.msra.mxu1 %v1067_v32  ;;  %701 = vmatprep.subr.bf16.mxu0 %v1068_v33 }
  0x38   : > { %742 = vmatprep.subr.bf16.mxu1 %v1070_v34 }
  0x3a   : > { %702 = vmatpush1.bf16.msra.mxu0 %v1072_v35 }
  0x3b   : > { %743 = vmatpush1.bf16.msra.mxu1 %v1073_v36  ;;  %703 = vmatprep.subr.bf16.mxu0 %v1074_v37 }
  0x3c   : > { %744 = vmatprep.subr.bf16.mxu1 %v1076_v38 }
  0x3e   : > { %704 = vmatpush1.bf16.msra.mxu0 %v1078_v39 }
  0x3f   : > { %745 = vmatpush1.bf16.msra.mxu1 %v1079_v40  ;;  %705 = vmatprep.subr.bf16.mxu0 %v1080_v41 }
  0x40   : > { %746 = vmatprep.subr.bf16.mxu1 %v1082_v42 }
  0x42   : > { %706 = vmatpush1.bf16.msra.mxu0 %v1084_v43 }
  0x43   : > { %747 = vmatpush1.bf16.msra.mxu1 %v1085_v44  ;;  %707 = vmatprep.subr.bf16.mxu0 %v1086_v45 }
  0x44   : > { %748 = vmatprep.subr.bf16.mxu1 %v1088_v46 }
  0x46   : > { %708 = vmatpush1.bf16.msra.mxu0 %v1090_v50 }
  0x47   : > { %749 = vmatpush1.bf16.msra.mxu1 %v1091_v51  ;;  %709 = vmatprep.subr.bf16.mxu0 %v1092_v53 }
  0x48   : > { %750 = vmatprep.subr.bf16.mxu1 %v1094_v54 }
  0x4a   : > { %710 = vmatpush1.bf16.msra.mxu0 %v1096_v55 }
  0x4b   : > { %751 = vmatpush1.bf16.msra.mxu1 %v1097_v56  ;;  %711 = vmatprep.subr.bf16.mxu0 %v1098_v57 }
  0x4c   : > { %752 = vmatprep.subr.bf16.mxu1 %v1100_v58 }
  0x4e   : > { %712 = vmatpush1.bf16.msra.mxu0 %v1102_v59 }
  0x4f   : > { %753 = vmatpush1.bf16.msra.mxu1 %v1103_v60  ;;  %713 = vmatprep.subr.bf16.mxu0 %v1104_v61 }
  0x50   : > { %754 = vmatprep.subr.bf16.mxu1 %v1106_v62 }
  0x52   : > { %714 = vmatpush1.bf16.msra.mxu0 %v1108_v63 }
  0x53   : > { %755 = vmatpush1.bf16.msra.mxu1 %v1109_v0  ;;  %715 = vmatprep.subr.bf16.mxu0 %v1110_v1 }
  0x54   : > { %756 = vmatprep.subr.bf16.mxu1 %v1112_v2 }
  0x56   : > { %716 = vmatpush1.bf16.msra.mxu0 %v1114_v3 }
  0x57   : > { %757 = vmatpush1.bf16.msra.mxu1 %v1115_v4 }
  0x59   : > { %718 = vmatmul.mubr.bf16.vlgmr.msra.gmra.mrb[0].mxu0 %v921_v5 }
  0x5a   : > { %759 = vmatmul.mubr.bf16.vlgmr.msra.gmra.mrb[0].mxu1 %v923_v6 }
 0x12c   : > { %v719_v7 = vpop.f32.mrb[0].mxu0 }
 0x12d   : > { %v760_v9 = vpop.f32.mrb[0].mxu1  ;;  %v721_v11 = vpop.f32.mrb[1].mxu0  ;;  %774 = sbr.rel (%p989_p7) target bundleno = 318 (0x13e), region = 40 }
 0x12e   : > { %v761_v10 = vadd.f32 %v760_v9, %v719_v7  ;;  %v762_v13 = vpop.f32.mrb[1].mxu1  ;;  %v723_v15 = vpop.f32.mrb[2].mxu0 }
 0x12f   : > { %v763_v14 = vadd.f32 %v762_v13, %v721_v11  ;;  %v764_v16 = vpop.f32.mrb[2].mxu1  ;;  %v724_v18 = vpop.f32.mrb[3].mxu0 }
 0x130   : > { %v767_v17 = vadd.f32 %v761_v10, %v283_v8  ;;  %v765_v19 = vpop.f32.mrb[3].mxu1 }
 0x131   : > { %v768_v20 = vadd.f32 %v763_v14, %v284_v12 }
 0x132   : > { %769 = vst [vmem:[%s1310_s3] sm:$0xff] %v767_v17 }
 0x133   : > { %770 = vst [vmem:[%s1310_s3 + $0x8] sm:$0xff] %v768_v20 }
 0x139   : > { %v775_v26 = vld [vmem:[%s1310_s3] sm:$0xff] }
 0x13a   : > { %v776_v27 = vld [vmem:[%s1310_s3 + $0x8] sm:$0xff]  ;;  %v789_v30 = vadd.f32 %v782_v28, %v775_v26 }
 0x13b   : > { %v790_v31 = vadd.f32 %v786_v29, %v776_v27 }
 0x13c   : > { %791 = vst [vmem:[%s1310_s3] sm:$0xff] %v789_v30 }
 0x13d   : > { %792 = vst [vmem:[%s1310_s3 + $0x8] sm:$0xff] %v790_v31 }
 0x13e PF: > { %s13_s14 = sadd.s32 1, %s1142_s14   ;;  %s1311_s12 = smov %s1138_s13 }
 0x13f   : > { %p10_p8 = scmp.ge.s32.totalorder %s13_s14, 79   ;;  %s1312_s13 = smov %s1314_s15 }
 0x141   :  { %12 = sbr.rel (!%p10_p8) target bundleno = 2 (0x2), region = 76 }

// kernel: my_compgcn_forward.18
= control target key start
LH: loop header
LB: loop body
LE: loop exit
PB: predicated region body
PF: predicated region fallthrough
CT: control target
= control target key end

     0   :  { %v18_v0 = vlaneseq  ;;  %s90_s1 = inlined_call_operand.vmem [shape: f32[1,256], index: 1, kind: input, shape index: {}]   ;;  %s91_s2 = inlined_call_operand.vmem [shape: f32[1,256], index: 2, kind: input, shape index: {}]   ;;  %s92_s0 = inlined_call_operand.vmem [shape: f32[8,256], index: 0, kind: input, shape index: {}]   ;;  %s93_s3 = inlined_call_operand.vmem [shape: f32[8,256], index: 3, kind: output, shape index: {}]  }
   0x1   :  { %v16_v2 = vld [vmem:[%s90_s1] sm:$0x3]  ;;  %v15_v7 = vld [vmem:[%s92_s0 + $0x8] sm:$0xff] }
   0x2   :  { %v19_v1 = vshrl.u32 %v18_v0, 7  ;;  %v30_v3 = vld [vmem:[%s91_s2] sm:$0x3] }
   0x3   :  { %v14_v6 = vld [vmem:[%s92_s0] sm:$0xff] }
   0x4   :  { %v20_v4 = vsub.s32 0, %v19_v1  ;;  %v24_v5 = vsub.s32 1, %v19_v1 }
   0x6   :  { %v21_v8 = vrot.slane %v16_v2, %v20_v4  ;;  %v35_v9 = vrot.slane %v30_v3, %v20_v4  ;;  %v25_v10 = vrot.slane %v16_v2, %v24_v5  ;;  %v39_v11 = vrot.slane %v30_v3, %v24_v5 }
   0x8   :  { %v28_v12 = vmul.f32 %v21_v8, %v14_v6  ;;  %v29_v13 = vmul.f32 %v25_v10, %v15_v7 }
   0xa   :  { %v42_v14 = vadd.f32 %v35_v9, %v28_v12  ;;  %v43_v15 = vadd.f32 %v39_v11, %v29_v13 }
   0xc   :  { %v44_v16 = vmax.f32 %v42_v14, 0.0  ;;  %v45_v17 = vmax.f32 %v43_v15, 0.0 }
   0xe   :  { %46 = vst [vmem:[%s93_s3] sm:$0xff] %v44_v16  ;;  %47 = vst [vmem:[%s93_s3 + $0x8] sm:$0xff] %v45_v17 }

// kernel: my_compgcn_forward.19
= control target key start
LH: loop header
LB: loop body
LE: loop exit
PB: predicated region body
PF: predicated region fallthrough
CT: control target
= control target key end

     0   :  { %s304_s1 = inlined_call_operand.vmem [shape: bf16[128,256], index: 1, kind: input, shape index: {}]   ;;  %s305_s0 = inlined_call_operand.vmem [shape: bf16[8,256], index: 0, kind: input, shape index: {}]   ;;  %s306_s2 = inlined_call_operand.vmem [shape: f32[1,128], index: 2, kind: input, shape index: {}]   ;;  %s307_s3 = inlined_call_operand.vmem [shape: f32[8,128], index: 3, kind: output, shape index: {}]  }
   0x1   :  { %v197_v0 = vld [vmem:[%s304_s1 + $0x4] ss:$8 sps:$4 sm:$0xff]   ;;  %v199_v1 = vld [vmem:[%s304_s1] ss:$8 sps:$4 sm:$0xff]   ;;  %v200_v2 = vld [vmem:[%s304_s1 + $0x14] ss:$8 sps:$4 sm:$0xff]  }
   0x2   :  { %126 = vmatprep.subr.bf16.mxu0 %v197_v0  ;;  %v202_v3 = vld [vmem:[%s304_s1 + $0x10] ss:$8 sps:$4 sm:$0xff]   ;;  %v203_v4 = vld [vmem:[%s304_s1 + $0x24] ss:$8 sps:$4 sm:$0xff]   ;;  %v205_v7 = vld [vmem:[%s304_s1 + $0x20] ss:$8 sps:$4 sm:$0xff]  }
   0x3   :  { %127 = vmatpush1.bf16.xpose.msra.mxu0 %v199_v1  ;;  %v15_v5 = vld [vmem:[%s305_s0] sm:$0xff]  ;;  %v206_v8 = vld [vmem:[%s304_s1 + $0x34] ss:$8 sps:$4 sm:$0xff]   ;;  %v208_v9 = vld [vmem:[%s304_s1 + $0x30] ss:$8 sps:$4 sm:$0xff]  }
   0x4   :  { %128 = vmatprep.subr.bf16.mxu0 %v200_v2  ;;  %v179_v6 = vcombine.high %v15_v5, %v15_v5  ;;  %v209_v10 = vld [vmem:[%s304_s1 + $0x44] ss:$8 sps:$4 sm:$0xff]   ;;  %v211_v11 = vld [vmem:[%s304_s1 + $0x40] ss:$8 sps:$4 sm:$0xff]   ;;  %v212_v12 = vld [vmem:[%s304_s1 + $0x54] ss:$8 sps:$4 sm:$0xff]   ;;  %v178_v18 = vcombine.low %v15_v5, %v15_v5 }
   0x5   :  { %v214_v13 = vld [vmem:[%s304_s1 + $0x50] ss:$8 sps:$4 sm:$0xff]   ;;  %v215_v14 = vld [vmem:[%s304_s1 + $0x64] ss:$8 sps:$4 sm:$0xff]   ;;  %v217_v15 = vld [vmem:[%s304_s1 + $0x60] ss:$8 sps:$4 sm:$0xff]  }
   0x6   :  { %158 = vmatprep.mubr.bf16.mxu0 %v179_v6  ;;  %v218_v16 = vld [vmem:[%s304_s1 + $0x74] ss:$8 sps:$4 sm:$0xff]   ;;  %v220_v17 = vld [vmem:[%s304_s1 + $0x70] ss:$8 sps:$4 sm:$0xff]   ;;  %v177_v19 = vld [vmem:[%s306_s2] ss:$0 sm:$0xff] }
   0xb   :  { %129 = vmatpush1.bf16.xpose.msra.mxu0 %v202_v3 }
   0xc   :  { %130 = vmatprep.subr.bf16.mxu0 %v203_v4 }
  0x13   :  { %131 = vmatpush1.bf16.xpose.msra.mxu0 %v205_v7 }
  0x14   :  { %132 = vmatprep.subr.bf16.mxu0 %v206_v8 }
  0x1b   :  { %133 = vmatpush1.bf16.xpose.msra.mxu0 %v208_v9 }
  0x1c   :  { %134 = vmatprep.subr.bf16.mxu0 %v209_v10 }
  0x23   :  { %135 = vmatpush1.bf16.xpose.msra.mxu0 %v211_v11 }
  0x24   :  { %136 = vmatprep.subr.bf16.mxu0 %v212_v12 }
  0x2b   :  { %137 = vmatpush1.bf16.xpose.msra.mxu0 %v214_v13 }
  0x2c   :  { %138 = vmatprep.subr.bf16.mxu0 %v215_v14 }
  0x33   :  { %139 = vmatpush1.bf16.xpose.msra.mxu0 %v217_v15 }
  0x34   :  { %140 = vmatprep.subr.bf16.mxu0 %v218_v16 }
  0x3b   :  { %141 = vmatpush1.bf16.xpose.msra.mxu0 %v220_v17 }
  0x42   :  { %159 = vmatmul.mubr.bf16.vlgmr.msra.gmra.mrb[0].mxu0 %v178_v18 }
 0x115   :  { %v160_v20 = vpop.f32.mrb[0].mxu0 }
 0x116   :  { %v161_v21 = vadd.f32 %v177_v19, %v160_v20  ;;  %v162_v22 = vpop.f32.mrb[1].mxu0 }
 0x117   :  { %v163_v23 = vpop.f32.mrb[2].mxu0 }
 0x118   :  { %v196_v24 = vmul.f32 -1.442695, %v161_v21  ;;  %v164_v25 = vpop.f32.mrb[3].mxu0 }
 0x11a   :  { %223 = vpow2.f32 %v196_v24 }
 0x124   :  { %v224_v26 = vpop.eup %223 }
 0x125   :  { %v169_v27 = vadd.f32 1.0, %v224_v26 }
 0x127   :  { %225 = vrcp.f32 %v169_v27 }
 0x131   :  { %v226_v28 = vpop.eup %225 }
 0x132   :  { %172 = vst [vmem:[%s307_s3] sm:$0xff] %v226_v28 }

</bundles_post_ra>
